<compile_context>
chip_gen: v6e
topology: v6e:2x2x1
jax: 0.10.0
libtpu: 0.0.40
codegen_flags: <defaults>
</compile_context>

<pallas_src>
import math
import functools

import jax
import jax.numpy as jnp
from jax import lax
from jax.experimental import pallas as pl
from jax.experimental.pallas import tpu as pltpu


# ----------------------------------------------------------------------------
# Weight packing helpers (PyTorch gate order i, f, g, o).
# Packed column layout (width 8H): [i_r, i_i, f_r, f_i, g_r, g_i, o_r, o_i],
# each sub-block H wide; "_r" = lstm_real weights, "_i" = lstm_imag weights.
# ----------------------------------------------------------------------------
def _pack_wih(w_ih_r, w_ih_i, H):
    """(4H, D) x2  ->  (D, 8H)."""
    D = w_ih_r.shape[1]
    wr = jnp.transpose(w_ih_r.reshape(4, H, D), (0, 2, 1))    # (gate, D, H)
    wi = jnp.transpose(w_ih_i.reshape(4, H, D), (0, 2, 1))
    w = jnp.concatenate([wr, wi], axis=2)                     # (gate, D, 2H)
    return jnp.transpose(w, (1, 0, 2)).reshape(D, 8 * H)


def _pack_whh(w_hh_r, w_hh_i, H):
    """(4H, H) x2 -> block-diagonal (2H, 8H); rows [0:H] drive the lstm_real
    recurrence, rows [H:2H] the lstm_imag recurrence."""
    whr = jnp.transpose(w_hh_r.reshape(4, H, H), (0, 2, 1))   # (gate, H_in, H_out)
    whi = jnp.transpose(w_hh_i.reshape(4, H, H), (0, 2, 1))
    z = jnp.zeros_like(whr)
    top = jnp.transpose(jnp.concatenate([whr, z], axis=2), (1, 0, 2)).reshape(H, 8 * H)
    bot = jnp.transpose(jnp.concatenate([z, whi], axis=2), (1, 0, 2)).reshape(H, 8 * H)
    return jnp.concatenate([top, bot], axis=0)                # (2H, 8H)


def _pack_bias(b_r, b_i, H):
    """(4H,) x2 -> (8H,) matching the packed column layout."""
    return jnp.concatenate([b_r.reshape(4, H), b_i.reshape(4, H)], axis=1).reshape(8 * H)


def _pack_combine(Mr, Mi, H, P, dtype):
    """Build the epilogue weights that fuse (rr - ii) / (ri + ir) with fc_{real,imag}.

    Row/col layout of the hidden history:
      real-stream rows hold [rr | ri] along 2H lanes,
      imag-stream rows hold [ir | ii] along 2H lanes.
    out = hr @ wa + hi @ wb + bias,  out cols = [real(P) | imag(P)].
    """
    z = jnp.zeros((H, P), dtype)
    wa = jnp.concatenate(
        [jnp.concatenate([Mr, z], axis=1),          # rr -> real
         jnp.concatenate([z, Mi], axis=1)], axis=0)  # ri -> imag
    wb = jnp.concatenate(
        [jnp.concatenate([z, Mi], axis=1),           # ir -> imag
         jnp.concatenate([-Mr, z], axis=1)], axis=0)  # -ii -> real
    return wa.astype(dtype), wb.astype(dtype)


# ----------------------------------------------------------------------------
# The fused ComplexLSTM kernel (single grid step, time loop inside).
# ----------------------------------------------------------------------------
def _fused_complex_lstm_kernel(x_ref, wih_ref, whh_ref, b_ref, wa_ref, wb_ref, ob_ref,
                               out_ref, gx_scr, h_scr, c_scr, hist_scr,
                               *, T, B, H, unroll):
    """Ref layouts:
      x_ref   : (T*2B, D)   row = t*2B + b; b in [0,B)=real stream, [B,2B)=imag stream
      wih_ref : (D, 8H)     packed input weights (gate-major, [real|imag] per gate)
      whh_ref : (2H, 8H)    block-diagonal recurrent weights (same column layout)
      b_ref   : (1, 8H)     combined b_ih + b_hh
      wa_ref  : (2H, 2P)    combine+projection weights for the real input stream
      wb_ref  : (2H, 2P)    combine+projection weights for the imag input stream
      ob_ref  : (1, 2P)     output bias ([fc_real.b | fc_imag.b] or zeros)
      out_ref : (T*B, 2P)   row = t*B + b, cols [0:P]=real out, [P:2P]=imag out
    Scratch:
      gx_scr   : (T, 2B, 8H)  precomputed input projections for all timesteps
      h_scr    : (2B, 2H)     cols [0:H] = lstm_real state, [H:2H] = lstm_imag state
      c_scr    : (2B, 2H)
      hist_scr : (T, 2B, 2H)  per-timestep hidden states (both LSTMs, both streams)
    """
    B2 = 2 * B
    H2 = 2 * H

    # --- Prologue: input projection for all timesteps / both LSTMs in ONE matmul.
    gx = jnp.dot(x_ref[...], wih_ref[...],
                 preferred_element_type=jnp.float32) + b_ref[...]       # (T*2B, 8H)
    gx_scr[...] = gx.reshape(T, B2, 8 * H)

    h_scr[...] = jnp.zeros_like(h_scr)
    c_scr[...] = jnp.zeros_like(c_scr)

    # --- Recurrence: only the (block-diag, fused) h @ Whh matmul is serial.
    def step(t, carry):
        gates = gx_scr[t] + jnp.dot(
            h_scr[...].astype(whh_ref.dtype), whh_ref[...],
            preferred_element_type=jnp.float32)                         # (2B, 8H)

        i_g = jax.nn.sigmoid(gates[:, 0 * H2:1 * H2])
        f_g = jax.nn.sigmoid(gates[:, 1 * H2:2 * H2])
        g_g = jnp.tanh(gates[:, 2 * H2:3 * H2])
        o_g = jax.nn.sigmoid(gates[:, 3 * H2:4 * H2])

        c_new = f_g * c_scr[...] + i_g * g_g
        h_new = o_g * jnp.tanh(c_new)
        c_scr[...] = c_new
        h_scr[...] = h_new
        hist_scr[t] = h_new
        return carry

    lax.fori_loop(0, T, step, 0, unroll=unroll)

    # --- Epilogue (vectorized over all timesteps, all on the MXU):
    #   rows [0:B]  = "real" input stream,  rows [B:2B] = "imag" input stream
    #   out = hr @ wa + hi @ wb + bias   (combine + fc projections fused in wa/wb)
    h_all = hist_scr[...]                                               # (T, 2B, 2H)
    hr = h_all[:, 0:B, :].reshape(T * B, H2)
    hi = h_all[:, B:B2, :].reshape(T * B, H2)
    out = (jnp.dot(hr.astype(wa_ref.dtype), wa_ref[...],
                   preferred_element_type=jnp.float32)
           + jnp.dot(hi.astype(wb_ref.dtype), wb_ref[...],
                     preferred_element_type=jnp.float32)
           + ob_ref[...])
    out_ref[...] = out.astype(out_ref.dtype)


# ----------------------------------------------------------------------------
# ComplexLSTM forward (Pallas-backed, one pallas_call for the whole module)
# ----------------------------------------------------------------------------
def complex_lstm_forward(params, x, *, mxu_dtype=None):
    """x: (B, C, F, T) -> (B, C, P // (C//2), T), matching the torch module."""
    B, C, F, T = x.shape
    C2 = C // 2
    D = C2 * F

    pr, pi = params["lstm_real"], params["lstm_imag"]
    H = pr["w_hh"].shape[1]

    # ---- wrapper-side layout: one transpose of the input, then reshapes only.
    x_t = jnp.transpose(x, (3, 0, 1, 2))                        # (T, B, C, F)
    real = x_t[:, :, :C2, :].reshape(T, B, D)
    imag = x_t[:, :, C2:, :].reshape(T, B, D)
    x_flat = jnp.concatenate([real, imag], axis=1).reshape(T * 2 * B, D)

    # ---- pack the two LSTMs' weights into one fused set.
    wih = _pack_wih(pr["w_ih"], pi["w_ih"], H)                  # (D, 8H)
    whh = _pack_whh(pr["w_hh"], pi["w_hh"], H)                  # (2H, 8H)
    bias = _pack_bias(pr["b_ih"] + pr["b_hh"],
                      pi["b_ih"] + pi["b_hh"], H)[None, :]      # (1, 8H)

    # ---- epilogue weights: combine (rr-ii / ri+ir) fused with the fc projections.
    has_fc = "fc_real" in params
    if has_fc:
        P = params["fc_real"]["w"].shape[0]
        Mr = jnp.transpose(params["fc_real"]["w"])              # (H, P)
        Mi = jnp.transpose(params["fc_imag"]["w"])
        ob = jnp.concatenate([params["fc_real"]["b"],
                              params["fc_imag"]["b"]])[None, :]  # (1, 2P)
    else:
        P = H
        Mr = jnp.eye(H, dtype=x.dtype)
        Mi = jnp.eye(H, dtype=x.dtype)
        ob = jnp.zeros((1, 2 * P), x.dtype)
    wa, wb = _pack_combine(Mr, Mi, H, P, x.dtype)               # (2H, 2P) each

    inputs = [x_flat, wih, whh, bias, wa, wb, ob]

    # Optional: feed the MXU bf16 on v6e/v7x (h/c state and accumulation stay f32).
    if mxu_dtype is not None:
        inputs = [a.astype(mxu_dtype) for a in inputs]

    def full_spec(shape):
        nd = len(shape)
        return pl.BlockSpec(shape, lambda i, _nd=nd: (0,) * _nd)

    in_specs = [full_spec(a.shape) for a in inputs]

    kernel = functools.partial(
        _fused_complex_lstm_kernel,
        T=T, B=B, H=H,
        unroll=True if T <= 32 else 8)

    out = pl.pallas_call(
        kernel,
        out_shape=jax.ShapeDtypeStruct((T * B, 2 * P), x.dtype),
        grid_spec=pltpu.PrefetchScalarGridSpec(
            num_scalar_prefetch=0,
            grid=(1,),                                  # whole sequence in one step
            in_specs=in_specs,
            out_specs=pl.BlockSpec((T * B, 2 * P), lambda i: (0, 0)),
            scratch_shapes=[
                pltpu.VMEM((T, 2 * B, 8 * H), jnp.float32),   # gates_x, all timesteps
                pltpu.VMEM((2 * B, 2 * H), jnp.float32),      # h state (both LSTMs)
                pltpu.VMEM((2 * B, 2 * H), jnp.float32),      # c state
                pltpu.VMEM((T, 2 * B, 2 * H), jnp.float32),   # hidden-state history
            ],
        ),
        compiler_params=pltpu.CompilerParams(
            dimension_semantics=("arbitrary",)),
    )(*inputs)

    # (T*B, 2P): cols [0:P]=real, [P:2P]=imag; row = t*B + b  ->  (B, C, P', T)
    Pp = P // C2
    out = out.reshape(T, B, 2, C2, Pp)
    out = jnp.transpose(out, (1, 2, 3, 4, 0)).reshape(B, 2 * C2, Pp, T)
    return out


# ----------------------------------------------------------------------------
# Deterministic parameter init (PyTorch shapes; uniform(-1/sqrt(H), 1/sqrt(H)))
# ----------------------------------------------------------------------------
def init_complex_lstm_params(key, input_size, hidden_size, projection_size=None):
    bound = 1.0 / math.sqrt(hidden_size)
    keys = jax.random.split(key, 12)

    def u(k, shape):
        return jax.random.uniform(k, shape, jnp.float32, -bound, bound)

    params = {
        "lstm_real": {
            "w_ih": u(keys[0], (4 * hidden_size, input_size)),
            "w_hh": u(keys[1], (4 * hidden_size, hidden_size)),
            "b_ih": u(keys[2], (4 * hidden_size,)),
            "b_hh": u(keys[3], (4 * hidden_size,)),
        },
        "lstm_imag": {
            "w_ih": u(keys[4], (4 * hidden_size, input_size)),
            "w_hh": u(keys[5], (4 * hidden_size, hidden_size)),
            "b_ih": u(keys[6], (4 * hidden_size,)),
            "b_hh": u(keys[7], (4 * hidden_size,)),
        },
    }
    if projection_size is not None:
        params["fc_real"] = {
            "w": u(keys[8], (projection_size, hidden_size)),
            "b": u(keys[9], (projection_size,)),
        }
        params["fc_imag"] = {
            "w": u(keys[10], (projection_size, hidden_size)),
            "b": u(keys[11], (projection_size,)),
        }
    return params


# ----------------------------------------------------------------------------
# Pure-JAX reference (correctness check of the Pallas path)
# ----------------------------------------------------------------------------
def _lstm_ref(x, w_ih, w_hh, b_ih, b_hh):
    B, T, D = x.shape
    H = w_hh.shape[1]

    def step(carry, x_t):
        h, c = carry
        g = x_t @ w_ih.T + b_ih + h @ w_hh.T + b_hh
        i = jax.nn.sigmoid(g[:, :H])
        f = jax.nn.sigmoid(g[:, H:2 * H])
        gg = jnp.tanh(g[:, 2 * H:3 * H])
        o = jax.nn.sigmoid(g[:, 3 * H:])
        c = f * c + i * gg
        h = o * jnp.tanh(c)
        return (h, c), h

    init = (jnp.zeros((B, H), x.dtype), jnp.zeros((B, H), x.dtype))
    _, ys = lax.scan(step, init, jnp.transpose(x, (1, 0, 2)))
    return jnp.transpose(ys, (1, 0, 2))


def complex_lstm_ref(params, x):
    B, C, F, T = x.shape
    real = jnp.transpose(x[:, : C // 2], (0, 3, 1, 2)).reshape(B, T, -1)
    imag = jnp.transpose(x[:, C // 2:], (0, 3, 1, 2)).reshape(B, T, -1)
    pr, pi = params["lstm_real"], params["lstm_imag"]
    rr = _lstm_ref(real, pr["w_ih"], pr["w_hh"], pr["b_ih"], pr["b_hh"])
    ii = _lstm_ref(imag, pi["w_ih"], pi["w_hh"], pi["b_ih"], pi["b_hh"])
    ri = _lstm_ref(real, pi["w_ih"], pi["w_hh"], pi["b_ih"], pi["b_hh"])
    ir = _lstm_ref(imag, pr["w_ih"], pr["w_hh"], pr["b_ih"], pr["b_hh"])
    real_o, imag_o = rr - ii, ri + ir
    if "fc_real" in params:
        real_o = real_o @ params["fc_real"]["w"].T + params["fc_real"]["b"]
        imag_o = imag_o @ params["fc_imag"]["w"].T + params["fc_imag"]["b"]
    real_o = jnp.transpose(real_o.reshape(B, T, C // 2, -1), (0, 2, 3, 1))
    imag_o = jnp.transpose(imag_o.reshape(B, T, C // 2, -1), (0, 2, 3, 1))
    return jnp.concatenate([real_o, imag_o], axis=1)


if __name__ == "__main__":
    # Small shapes: batch=2, channels=4 (2 real + 2 imag), freqs=16, frames=8
    B, C, F, T = 2, 4, 16, 8
    input_size = (C // 2) * F          # 32
    hidden_size = 32
    projection_size = 16

    key = jax.random.PRNGKey(0)
    kx, kp = jax.random.split(key)
    x = jax.random.normal(kx, (B, C, F, T), dtype=jnp.float32)
    params = init_complex_lstm_params(kp, input_size, hidden_size, projection_size)

    fwd = jax.jit(functools.partial(complex_lstm_forward, params))
    out = jax.block_until_ready(fwd(x))

    ref = complex_lstm_ref(params, x)
    assert out.shape == (B, C, projection_size // (C // 2), T), out.shape
    assert jnp.allclose(out, ref, atol=1e-4, rtol=1e-4), (
        float(jnp.max(jnp.abs(out - ref))))

    # Also exercise the no-projection path (output size = hidden_size).
    params_np = {k: v for k, v in params.items() if k.startswith("lstm")}
    out_np = jax.block_until_ready(
        jax.jit(functools.partial(complex_lstm_forward, params_np))(x))
    ref_np = complex_lstm_ref(params_np, x)
    assert jnp.allclose(out_np, ref_np, atol=1e-4, rtol=1e-4), (
        float(jnp.max(jnp.abs(out_np - ref_np))))

    print("KERNEL_OK")
</pallas_src>

<mosaic_0001>
module attributes {stable_mosaic.version = 11 : i64} {
  func.func @_fused_complex_lstm_kernel(%arg0: i32, %arg1: memref<32x32xf32, #tpu.memory_space<vmem>>, %arg2: memref<32x256xf32, #tpu.memory_space<vmem>>, %arg3: memref<64x256xf32, #tpu.memory_space<vmem>>, %arg4: memref<1x256xf32, #tpu.memory_space<vmem>>, %arg5: memref<64x32xf32, #tpu.memory_space<vmem>>, %arg6: memref<64x32xf32, #tpu.memory_space<vmem>>, %arg7: memref<1x32xf32, #tpu.memory_space<vmem>>, %arg8: memref<16x32xf32, #tpu.memory_space<vmem>>, %arg9: memref<8x4x256xf32, #tpu.memory_space<vmem>>, %arg10: memref<4x64xf32, #tpu.memory_space<vmem>>, %arg11: memref<4x64xf32, #tpu.memory_space<vmem>>, %arg12: memref<8x4x64xf32, #tpu.memory_space<vmem>>) attributes {dimension_semantics = [#tpu.dimension_semantics<arbitrary>], iteration_bounds = array<i64: 1>, scalar_prefetch = 0 : i64, scratch_operands = 4 : i64, tpu.core_type = #tpu.core_type<tc>, window_params = [{pipeline_mode = #tpu.pipeline_mode<synchronous>, transform_indices = @transform_0, window_bounds = array<i64: 32, 32>}, {pipeline_mode = #tpu.pipeline_mode<synchronous>, transform_indices = @transform_1, window_bounds = array<i64: 32, 256>}, {pipeline_mode = #tpu.pipeline_mode<synchronous>, transform_indices = @transform_2, window_bounds = array<i64: 64, 256>}, {pipeline_mode = #tpu.pipeline_mode<synchronous>, transform_indices = @transform_3, window_bounds = array<i64: 1, 256>}, {pipeline_mode = #tpu.pipeline_mode<synchronous>, transform_indices = @transform_4, window_bounds = array<i64: 64, 32>}, {pipeline_mode = #tpu.pipeline_mode<synchronous>, transform_indices = @transform_5, window_bounds = array<i64: 64, 32>}, {pipeline_mode = #tpu.pipeline_mode<synchronous>, transform_indices = @transform_6, window_bounds = array<i64: 1, 32>}, {pipeline_mode = #tpu.pipeline_mode<synchronous>, transform_indices = @transform_7, window_bounds = array<i64: 16, 32>}]} {
    %c0 = arith.constant 0 : index
    %c0_0 = arith.constant 0 : index
    %0 = vector.load %arg1[%c0, %c0_0] : memref<32x32xf32, #tpu.memory_space<vmem>>, vector<32x32xf32>
    %c0_1 = arith.constant 0 : index
    %c0_2 = arith.constant 0 : index
    %1 = vector.load %arg2[%c0_1, %c0_2] : memref<32x256xf32, #tpu.memory_space<vmem>>, vector<32x256xf32>
    %cst = arith.constant dense<0.000000e+00> : vector<32x256xf32>
    %2 = tpu.matmul %0, %1, %cst {dimension_numbers = #tpu.dot_dimension_numbers<[1], [0], [0], [1], [0, 0, 1, 1], [], []>} : vector<32x32xf32>, vector<32x256xf32>, vector<32x256xf32> -> vector<32x256xf32>
    %c0_3 = arith.constant 0 : index
    %c0_4 = arith.constant 0 : index
    %3 = vector.load %arg4[%c0_3, %c0_4] : memref<1x256xf32, #tpu.memory_space<vmem>>, vector<1x256xf32>
    %4 = vector.broadcast %3 : vector<1x256xf32> to vector<32x256xf32>
    %5 = arith.addf %2, %4 : vector<32x256xf32>
    %6 = vector.shape_cast %5 : vector<32x256xf32> to vector<8x4x256xf32>
    %c0_5 = arith.constant 0 : index
    %c0_6 = arith.constant 0 : index
    %c0_7 = arith.constant 0 : index
    %7 = vector.load %arg9[%c0_5, %c0_6, %c0_7] : memref<8x4x256xf32, #tpu.memory_space<vmem>>, vector<8x4x256xf32>
    tpu.vector_store %arg9[%c0_5, %c0_6, %c0_7], %6 {strides = array<i32>} : memref<8x4x256xf32, #tpu.memory_space<vmem>>, vector<8x4x256xf32>,
    %cst_8 = arith.constant 0.000000e+00 : f32
    %8 = vector.broadcast %cst_8 : f32 to vector<4x64xf32>
    %c0_9 = arith.constant 0 : index
    %c0_10 = arith.constant 0 : index
    %9 = vector.load %arg10[%c0_9, %c0_10] : memref<4x64xf32, #tpu.memory_space<vmem>>, vector<4x64xf32>
    tpu.vector_store %arg10[%c0_9, %c0_10], %8 {strides = array<i32>} : memref<4x64xf32, #tpu.memory_space<vmem>>, vector<4x64xf32>,
    %cst_11 = arith.constant 0.000000e+00 : f32
    %10 = vector.broadcast %cst_11 : f32 to vector<4x64xf32>
    %c0_12 = arith.constant 0 : index
    %c0_13 = arith.constant 0 : index
    %11 = vector.load %arg11[%c0_12, %c0_13] : memref<4x64xf32, #tpu.memory_space<vmem>>, vector<4x64xf32>
    tpu.vector_store %arg11[%c0_12, %c0_13], %10 {strides = array<i32>} : memref<4x64xf32, #tpu.memory_space<vmem>>, vector<4x64xf32>,
    %c0_i32 = arith.constant 0 : i32
    %12 = arith.index_cast %c0_i32 : i32 to index
    %c0_14 = arith.constant 0 : index
    %c0_15 = arith.constant 0 : index
    %13 = vector.load %arg9[%12, %c0_14, %c0_15] : memref<8x4x256xf32, #tpu.memory_space<vmem>>, vector<1x4x256xf32>
    %14 = vector.shape_cast %13 : vector<1x4x256xf32> to vector<4x256xf32>
    %c0_16 = arith.constant 0 : index
    %c0_17 = arith.constant 0 : index
    %15 = vector.load %arg10[%c0_16, %c0_17] : memref<4x64xf32, #tpu.memory_space<vmem>>, vector<4x64xf32>
    %c0_18 = arith.constant 0 : index
    %c0_19 = arith.constant 0 : index
    %16 = vector.load %arg3[%c0_18, %c0_19] : memref<64x256xf32, #tpu.memory_space<vmem>>, vector<64x256xf32>
    %cst_20 = arith.constant dense<0.000000e+00> : vector<4x256xf32>
    %17 = tpu.matmul %15, %16, %cst_20 {dimension_numbers = #tpu.dot_dimension_numbers<[1], [0], [0], [1], [0, 0, 1, 1], [], []>} : vector<4x64xf32>, vector<64x256xf32>, vector<4x256xf32> -> vector<4x256xf32>
    %18 = arith.addf %14, %17 : vector<4x256xf32>
    %19 = vector.extract_strided_slice %18 {offsets = [0, 0], sizes = [4, 64], strides = [1, 1]} : vector<4x256xf32> to vector<4x64xf32>
    %20 = arith.negf %19 : vector<4x64xf32>
    %21 = math.exp %20 : vector<4x64xf32>
    %cst_21 = arith.constant 1.000000e+00 : f32
    %22 = vector.broadcast %cst_21 : f32 to vector<4x64xf32>
    %23 = arith.addf %22, %21 : vector<4x64xf32>
    %24 = arith.divf %22, %23 : vector<4x64xf32>
    %25 = vector.extract_strided_slice %18 {offsets = [0, 64], sizes = [4, 64], strides = [1, 1]} : vector<4x256xf32> to vector<4x64xf32>
    %26 = arith.negf %25 : vector<4x64xf32>
    %27 = math.exp %26 : vector<4x64xf32>
    %cst_22 = arith.constant 1.000000e+00 : f32
    %28 = vector.broadcast %cst_22 : f32 to vector<4x64xf32>
    %29 = arith.addf %28, %27 : vector<4x64xf32>
    %30 = arith.divf %28, %29 : vector<4x64xf32>
    %31 = vector.extract_strided_slice %18 {offsets = [0, 128], sizes = [4, 64], strides = [1, 1]} : vector<4x256xf32> to vector<4x64xf32>
    %32 = math.tanh %31 : vector<4x64xf32>
    %33 = vector.extract_strided_slice %18 {offsets = [0, 192], sizes = [4, 64], strides = [1, 1]} : vector<4x256xf32> to vector<4x64xf32>
    %34 = arith.negf %33 : vector<4x64xf32>
    %35 = math.exp %34 : vector<4x64xf32>
    %cst_23 = arith.constant 1.000000e+00 : f32
    %36 = vector.broadcast %cst_23 : f32 to vector<4x64xf32>
    %37 = arith.addf %36, %35 : vector<4x64xf32>
    %38 = arith.divf %36, %37 : vector<4x64xf32>
    %c0_24 = arith.constant 0 : index
    %c0_25 = arith.constant 0 : index
    %39 = vector.load %arg11[%c0_24, %c0_25] : memref<4x64xf32, #tpu.memory_space<vmem>>, vector<4x64xf32>
    %40 = arith.mulf %30, %39 : vector<4x64xf32>
    %41 = arith.mulf %24, %32 : vector<4x64xf32>
    %42 = arith.addf %40, %41 : vector<4x64xf32>
    %43 = math.tanh %42 : vector<4x64xf32>
    %44 = arith.mulf %38, %43 : vector<4x64xf32>
    %c0_26 = arith.constant 0 : index
    %c0_27 = arith.constant 0 : index
    %45 = vector.load %arg11[%c0_26, %c0_27] : memref<4x64xf32, #tpu.memory_space<vmem>>, vector<4x64xf32>
    tpu.vector_store %arg11[%c0_26, %c0_27], %42 {strides = array<i32>} : memref<4x64xf32, #tpu.memory_space<vmem>>, vector<4x64xf32>,
    %c0_28 = arith.constant 0 : index
    %c0_29 = arith.constant 0 : index
    %46 = vector.load %arg10[%c0_28, %c0_29] : memref<4x64xf32, #tpu.memory_space<vmem>>, vector<4x64xf32>
    tpu.vector_store %arg10[%c0_28, %c0_29], %44 {strides = array<i32>} : memref<4x64xf32, #tpu.memory_space<vmem>>, vector<4x64xf32>,
    %47 = arith.index_cast %c0_i32 : i32 to index
    %c0_30 = arith.constant 0 : index
    %c0_31 = arith.constant 0 : index
    %48 = vector.load %arg12[%47, %c0_30, %c0_31] : memref<8x4x64xf32, #tpu.memory_space<vmem>>, vector<1x4x64xf32>
    %49 = vector.shape_cast %48 : vector<1x4x64xf32> to vector<4x64xf32>
    %50 = vector.shape_cast %44 : vector<4x64xf32> to vector<1x4x64xf32>
    tpu.vector_store %arg12[%47, %c0_30, %c0_31], %50 {strides = array<i32>} : memref<8x4x64xf32, #tpu.memory_space<vmem>>, vector<1x4x64xf32>,
    %c1_i32 = arith.constant 1 : i32
    %51 = arith.index_cast %c1_i32 : i32 to index
    %c0_32 = arith.constant 0 : index
    %c0_33 = arith.constant 0 : index
    %52 = vector.load %arg9[%51, %c0_32, %c0_33] : memref<8x4x256xf32, #tpu.memory_space<vmem>>, vector<1x4x256xf32>
    %53 = vector.shape_cast %52 : vector<1x4x256xf32> to vector<4x256xf32>
    %c0_34 = arith.constant 0 : index
    %c0_35 = arith.constant 0 : index
    %54 = vector.load %arg10[%c0_34, %c0_35] : memref<4x64xf32, #tpu.memory_space<vmem>>, vector<4x64xf32>
    %c0_36 = arith.constant 0 : index
    %c0_37 = arith.constant 0 : index
    %55 = vector.load %arg3[%c0_36, %c0_37] : memref<64x256xf32, #tpu.memory_space<vmem>>, vector<64x256xf32>
    %cst_38 = arith.constant dense<0.000000e+00> : vector<4x256xf32>
    %56 = tpu.matmul %54, %55, %cst_38 {dimension_numbers = #tpu.dot_dimension_numbers<[1], [0], [0], [1], [0, 0, 1, 1], [], []>} : vector<4x64xf32>, vector<64x256xf32>, vector<4x256xf32> -> vector<4x256xf32>
    %57 = arith.addf %53, %56 : vector<4x256xf32>
    %58 = vector.extract_strided_slice %57 {offsets = [0, 0], sizes = [4, 64], strides = [1, 1]} : vector<4x256xf32> to vector<4x64xf32>
    %59 = arith.negf %58 : vector<4x64xf32>
    %60 = math.exp %59 : vector<4x64xf32>
    %cst_39 = arith.constant 1.000000e+00 : f32
    %61 = vector.broadcast %cst_39 : f32 to vector<4x64xf32>
    %62 = arith.addf %61, %60 : vector<4x64xf32>
    %63 = arith.divf %61, %62 : vector<4x64xf32>
    %64 = vector.extract_strided_slice %57 {offsets = [0, 64], sizes = [4, 64], strides = [1, 1]} : vector<4x256xf32> to vector<4x64xf32>
    %65 = arith.negf %64 : vector<4x64xf32>
    %66 = math.exp %65 : vector<4x64xf32>
    %cst_40 = arith.constant 1.000000e+00 : f32
    %67 = vector.broadcast %cst_40 : f32 to vector<4x64xf32>
    %68 = arith.addf %67, %66 : vector<4x64xf32>
    %69 = arith.divf %67, %68 : vector<4x64xf32>
    %70 = vector.extract_strided_slice %57 {offsets = [0, 128], sizes = [4, 64], strides = [1, 1]} : vector<4x256xf32> to vector<4x64xf32>
    %71 = math.tanh %70 : vector<4x64xf32>
    %72 = vector.extract_strided_slice %57 {offsets = [0, 192], sizes = [4, 64], strides = [1, 1]} : vector<4x256xf32> to vector<4x64xf32>
    %73 = arith.negf %72 : vector<4x64xf32>
    %74 = math.exp %73 : vector<4x64xf32>
    %cst_41 = arith.constant 1.000000e+00 : f32
    %75 = vector.broadcast %cst_41 : f32 to vector<4x64xf32>
    %76 = arith.addf %75, %74 : vector<4x64xf32>
    %77 = arith.divf %75, %76 : vector<4x64xf32>
    %c0_42 = arith.constant 0 : index
    %c0_43 = arith.constant 0 : index
    %78 = vector.load %arg11[%c0_42, %c0_43] : memref<4x64xf32, #tpu.memory_space<vmem>>, vector<4x64xf32>
    %79 = arith.mulf %69, %78 : vector<4x64xf32>
    %80 = arith.mulf %63, %71 : vector<4x64xf32>
    %81 = arith.addf %79, %80 : vector<4x64xf32>
    %82 = math.tanh %81 : vector<4x64xf32>
    %83 = arith.mulf %77, %82 : vector<4x64xf32>
    %c0_44 = arith.constant 0 : index
    %c0_45 = arith.constant 0 : index
    %84 = vector.load %arg11[%c0_44, %c0_45] : memref<4x64xf32, #tpu.memory_space<vmem>>, vector<4x64xf32>
    tpu.vector_store %arg11[%c0_44, %c0_45], %81 {strides = array<i32>} : memref<4x64xf32, #tpu.memory_space<vmem>>, vector<4x64xf32>,
    %c0_46 = arith.constant 0 : index
    %c0_47 = arith.constant 0 : index
    %85 = vector.load %arg10[%c0_46, %c0_47] : memref<4x64xf32, #tpu.memory_space<vmem>>, vector<4x64xf32>
    tpu.vector_store %arg10[%c0_46, %c0_47], %83 {strides = array<i32>} : memref<4x64xf32, #tpu.memory_space<vmem>>, vector<4x64xf32>,
    %86 = arith.index_cast %c1_i32 : i32 to index
    %c0_48 = arith.constant 0 : index
    %c0_49 = arith.constant 0 : index
    %87 = vector.load %arg12[%86, %c0_48, %c0_49] : memref<8x4x64xf32, #tpu.memory_space<vmem>>, vector<1x4x64xf32>
    %88 = vector.shape_cast %87 : vector<1x4x64xf32> to vector<4x64xf32>
    %89 = vector.shape_cast %83 : vector<4x64xf32> to vector<1x4x64xf32>
    tpu.vector_store %arg12[%86, %c0_48, %c0_49], %89 {strides = array<i32>} : memref<8x4x64xf32, #tpu.memory_space<vmem>>, vector<1x4x64xf32>,
    %c2_i32 = arith.constant 2 : i32
    %90 = arith.index_cast %c2_i32 : i32 to index
    %c0_50 = arith.constant 0 : index
    %c0_51 = arith.constant 0 : index
    %91 = vector.load %arg9[%90, %c0_50, %c0_51] : memref<8x4x256xf32, #tpu.memory_space<vmem>>, vector<1x4x256xf32>
    %92 = vector.shape_cast %91 : vector<1x4x256xf32> to vector<4x256xf32>
    %c0_52 = arith.constant 0 : index
    %c0_53 = arith.constant 0 : index
    %93 = vector.load %arg10[%c0_52, %c0_53] : memref<4x64xf32, #tpu.memory_space<vmem>>, vector<4x64xf32>
    %c0_54 = arith.constant 0 : index
    %c0_55 = arith.constant 0 : index
    %94 = vector.load %arg3[%c0_54, %c0_55] : memref<64x256xf32, #tpu.memory_space<vmem>>, vector<64x256xf32>
    %cst_56 = arith.constant dense<0.000000e+00> : vector<4x256xf32>
    %95 = tpu.matmul %93, %94, %cst_56 {dimension_numbers = #tpu.dot_dimension_numbers<[1], [0], [0], [1], [0, 0, 1, 1], [], []>} : vector<4x64xf32>, vector<64x256xf32>, vector<4x256xf32> -> vector<4x256xf32>
    %96 = arith.addf %92, %95 : vector<4x256xf32>
    %97 = vector.extract_strided_slice %96 {offsets = [0, 0], sizes = [4, 64], strides = [1, 1]} : vector<4x256xf32> to vector<4x64xf32>
    %98 = arith.negf %97 : vector<4x64xf32>
    %99 = math.exp %98 : vector<4x64xf32>
    %cst_57 = arith.constant 1.000000e+00 : f32
    %100 = vector.broadcast %cst_57 : f32 to vector<4x64xf32>
    %101 = arith.addf %100, %99 : vector<4x64xf32>
    %102 = arith.divf %100, %101 : vector<4x64xf32>
    %103 = vector.extract_strided_slice %96 {offsets = [0, 64], sizes = [4, 64], strides = [1, 1]} : vector<4x256xf32> to vector<4x64xf32>
    %104 = arith.negf %103 : vector<4x64xf32>
    %105 = math.exp %104 : vector<4x64xf32>
    %cst_58 = arith.constant 1.000000e+00 : f32
    %106 = vector.broadcast %cst_58 : f32 to vector<4x64xf32>
    %107 = arith.addf %106, %105 : vector<4x64xf32>
    %108 = arith.divf %106, %107 : vector<4x64xf32>
    %109 = vector.extract_strided_slice %96 {offsets = [0, 128], sizes = [4, 64], strides = [1, 1]} : vector<4x256xf32> to vector<4x64xf32>
    %110 = math.tanh %109 : vector<4x64xf32>
    %111 = vector.extract_strided_slice %96 {offsets = [0, 192], sizes = [4, 64], strides = [1, 1]} : vector<4x256xf32> to vector<4x64xf32>
    %112 = arith.negf %111 : vector<4x64xf32>
    %113 = math.exp %112 : vector<4x64xf32>
    %cst_59 = arith.constant 1.000000e+00 : f32
    %114 = vector.broadcast %cst_59 : f32 to vector<4x64xf32>
    %115 = arith.addf %114, %113 : vector<4x64xf32>
    %116 = arith.divf %114, %115 : vector<4x64xf32>
    %c0_60 = arith.constant 0 : index
    %c0_61 = arith.constant 0 : index
    %117 = vector.load %arg11[%c0_60, %c0_61] : memref<4x64xf32, #tpu.memory_space<vmem>>, vector<4x64xf32>
    %118 = arith.mulf %108, %117 : vector<4x64xf32>
    %119 = arith.mulf %102, %110 : vector<4x64xf32>
    %120 = arith.addf %118, %119 : vector<4x64xf32>
    %121 = math.tanh %120 : vector<4x64xf32>
    %122 = arith.mulf %116, %121 : vector<4x64xf32>
    %c0_62 = arith.constant 0 : index
    %c0_63 = arith.constant 0 : index
    %123 = vector.load %arg11[%c0_62, %c0_63] : memref<4x64xf32, #tpu.memory_space<vmem>>, vector<4x64xf32>
    tpu.vector_store %arg11[%c0_62, %c0_63], %120 {strides = array<i32>} : memref<4x64xf32, #tpu.memory_space<vmem>>, vector<4x64xf32>,
    %c0_64 = arith.constant 0 : index
    %c0_65 = arith.constant 0 : index
    %124 = vector.load %arg10[%c0_64, %c0_65] : memref<4x64xf32, #tpu.memory_space<vmem>>, vector<4x64xf32>
    tpu.vector_store %arg10[%c0_64, %c0_65], %122 {strides = array<i32>} : memref<4x64xf32, #tpu.memory_space<vmem>>, vector<4x64xf32>,
    %125 = arith.index_cast %c2_i32 : i32 to index
    %c0_66 = arith.constant 0 : index
    %c0_67 = arith.constant 0 : index
    %126 = vector.load %arg12[%125, %c0_66, %c0_67] : memref<8x4x64xf32, #tpu.memory_space<vmem>>, vector<1x4x64xf32>
    %127 = vector.shape_cast %126 : vector<1x4x64xf32> to vector<4x64xf32>
    %128 = vector.shape_cast %122 : vector<4x64xf32> to vector<1x4x64xf32>
    tpu.vector_store %arg12[%125, %c0_66, %c0_67], %128 {strides = array<i32>} : memref<8x4x64xf32, #tpu.memory_space<vmem>>, vector<1x4x64xf32>,
    %c3_i32 = arith.constant 3 : i32
    %129 = arith.index_cast %c3_i32 : i32 to index
    %c0_68 = arith.constant 0 : index
    %c0_69 = arith.constant 0 : index
    %130 = vector.load %arg9[%129, %c0_68, %c0_69] : memref<8x4x256xf32, #tpu.memory_space<vmem>>, vector<1x4x256xf32>
    %131 = vector.shape_cast %130 : vector<1x4x256xf32> to vector<4x256xf32>
    %c0_70 = arith.constant 0 : index
    %c0_71 = arith.constant 0 : index
    %132 = vector.load %arg10[%c0_70, %c0_71] : memref<4x64xf32, #tpu.memory_space<vmem>>, vector<4x64xf32>
    %c0_72 = arith.constant 0 : index
    %c0_73 = arith.constant 0 : index
    %133 = vector.load %arg3[%c0_72, %c0_73] : memref<64x256xf32, #tpu.memory_space<vmem>>, vector<64x256xf32>
    %cst_74 = arith.constant dense<0.000000e+00> : vector<4x256xf32>
    %134 = tpu.matmul %132, %133, %cst_74 {dimension_numbers = #tpu.dot_dimension_numbers<[1], [0], [0], [1], [0, 0, 1, 1], [], []>} : vector<4x64xf32>, vector<64x256xf32>, vector<4x256xf32> -> vector<4x256xf32>
    %135 = arith.addf %131, %134 : vector<4x256xf32>
    %136 = vector.extract_strided_slice %135 {offsets = [0, 0], sizes = [4, 64], strides = [1, 1]} : vector<4x256xf32> to vector<4x64xf32>
    %137 = arith.negf %136 : vector<4x64xf32>
    %138 = math.exp %137 : vector<4x64xf32>
    %cst_75 = arith.constant 1.000000e+00 : f32
    %139 = vector.broadcast %cst_75 : f32 to vector<4x64xf32>
    %140 = arith.addf %139, %138 : vector<4x64xf32>
    %141 = arith.divf %139, %140 : vector<4x64xf32>
    %142 = vector.extract_strided_slice %135 {offsets = [0, 64], sizes = [4, 64], strides = [1, 1]} : vector<4x256xf32> to vector<4x64xf32>
    %143 = arith.negf %142 : vector<4x64xf32>
    %144 = math.exp %143 : vector<4x64xf32>
    %cst_76 = arith.constant 1.000000e+00 : f32
    %145 = vector.broadcast %cst_76 : f32 to vector<4x64xf32>
    %146 = arith.addf %145, %144 : vector<4x64xf32>
    %147 = arith.divf %145, %146 : vector<4x64xf32>
    %148 = vector.extract_strided_slice %135 {offsets = [0, 128], sizes = [4, 64], strides = [1, 1]} : vector<4x256xf32> to vector<4x64xf32>
    %149 = math.tanh %148 : vector<4x64xf32>
    %150 = vector.extract_strided_slice %135 {offsets = [0, 192], sizes = [4, 64], strides = [1, 1]} : vector<4x256xf32> to vector<4x64xf32>
    %151 = arith.negf %150 : vector<4x64xf32>
    %152 = math.exp %151 : vector<4x64xf32>
    %cst_77 = arith.constant 1.000000e+00 : f32
    %153 = vector.broadcast %cst_77 : f32 to vector<4x64xf32>
    %154 = arith.addf %153, %152 : vector<4x64xf32>
    %155 = arith.divf %153, %154 : vector<4x64xf32>
    %c0_78 = arith.constant 0 : index
    %c0_79 = arith.constant 0 : index
    %156 = vector.load %arg11[%c0_78, %c0_79] : memref<4x64xf32, #tpu.memory_space<vmem>>, vector<4x64xf32>
    %157 = arith.mulf %147, %156 : vector<4x64xf32>
    %158 = arith.mulf %141, %149 : vector<4x64xf32>
    %159 = arith.addf %157, %158 : vector<4x64xf32>
    %160 = math.tanh %159 : vector<4x64xf32>
    %161 = arith.mulf %155, %160 : vector<4x64xf32>
    %c0_80 = arith.constant 0 : index
    %c0_81 = arith.constant 0 : index
    %162 = vector.load %arg11[%c0_80, %c0_81] : memref<4x64xf32, #tpu.memory_space<vmem>>, vector<4x64xf32>
    tpu.vector_store %arg11[%c0_80, %c0_81], %159 {strides = array<i32>} : memref<4x64xf32, #tpu.memory_space<vmem>>, vector<4x64xf32>,
    %c0_82 = arith.constant 0 : index
    %c0_83 = arith.constant 0 : index
    %163 = vector.load %arg10[%c0_82, %c0_83] : memref<4x64xf32, #tpu.memory_space<vmem>>, vector<4x64xf32>
    tpu.vector_store %arg10[%c0_82, %c0_83], %161 {strides = array<i32>} : memref<4x64xf32, #tpu.memory_space<vmem>>, vector<4x64xf32>,
    %164 = arith.index_cast %c3_i32 : i32 to index
    %c0_84 = arith.constant 0 : index
    %c0_85 = arith.constant 0 : index
    %165 = vector.load %arg12[%164, %c0_84, %c0_85] : memref<8x4x64xf32, #tpu.memory_space<vmem>>, vector<1x4x64xf32>
    %166 = vector.shape_cast %165 : vector<1x4x64xf32> to vector<4x64xf32>
    %167 = vector.shape_cast %161 : vector<4x64xf32> to vector<1x4x64xf32>
    tpu.vector_store %arg12[%164, %c0_84, %c0_85], %167 {strides = array<i32>} : memref<8x4x64xf32, #tpu.memory_space<vmem>>, vector<1x4x64xf32>,
    %c4_i32 = arith.constant 4 : i32
    %168 = arith.index_cast %c4_i32 : i32 to index
    %c0_86 = arith.constant 0 : index
    %c0_87 = arith.constant 0 : index
    %169 = vector.load %arg9[%168, %c0_86, %c0_87] : memref<8x4x256xf32, #tpu.memory_space<vmem>>, vector<1x4x256xf32>
    %170 = vector.shape_cast %169 : vector<1x4x256xf32> to vector<4x256xf32>
    %c0_88 = arith.constant 0 : index
    %c0_89 = arith.constant 0 : index
    %171 = vector.load %arg10[%c0_88, %c0_89] : memref<4x64xf32, #tpu.memory_space<vmem>>, vector<4x64xf32>
    %c0_90 = arith.constant 0 : index
    %c0_91 = arith.constant 0 : index
    %172 = vector.load %arg3[%c0_90, %c0_91] : memref<64x256xf32, #tpu.memory_space<vmem>>, vector<64x256xf32>
    %cst_92 = arith.constant dense<0.000000e+00> : vector<4x256xf32>
    %173 = tpu.matmul %171, %172, %cst_92 {dimension_numbers = #tpu.dot_dimension_numbers<[1], [0], [0], [1], [0, 0, 1, 1], [], []>} : vector<4x64xf32>, vector<64x256xf32>, vector<4x256xf32> -> vector<4x256xf32>
    %174 = arith.addf %170, %173 : vector<4x256xf32>
    %175 = vector.extract_strided_slice %174 {offsets = [0, 0], sizes = [4, 64], strides = [1, 1]} : vector<4x256xf32> to vector<4x64xf32>
    %176 = arith.negf %175 : vector<4x64xf32>
    %177 = math.exp %176 : vector<4x64xf32>
    %cst_93 = arith.constant 1.000000e+00 : f32
    %178 = vector.broadcast %cst_93 : f32 to vector<4x64xf32>
    %179 = arith.addf %178, %177 : vector<4x64xf32>
    %180 = arith.divf %178, %179 : vector<4x64xf32>
    %181 = vector.extract_strided_slice %174 {offsets = [0, 64], sizes = [4, 64], strides = [1, 1]} : vector<4x256xf32> to vector<4x64xf32>
    %182 = arith.negf %181 : vector<4x64xf32>
    %183 = math.exp %182 : vector<4x64xf32>
    %cst_94 = arith.constant 1.000000e+00 : f32
    %184 = vector.broadcast %cst_94 : f32 to vector<4x64xf32>
    %185 = arith.addf %184, %183 : vector<4x64xf32>
    %186 = arith.divf %184, %185 : vector<4x64xf32>
    %187 = vector.extract_strided_slice %174 {offsets = [0, 128], sizes = [4, 64], strides = [1, 1]} : vector<4x256xf32> to vector<4x64xf32>
    %188 = math.tanh %187 : vector<4x64xf32>
    %189 = vector.extract_strided_slice %174 {offsets = [0, 192], sizes = [4, 64], strides = [1, 1]} : vector<4x256xf32> to vector<4x64xf32>
    %190 = arith.negf %189 : vector<4x64xf32>
    %191 = math.exp %190 : vector<4x64xf32>
    %cst_95 = arith.constant 1.000000e+00 : f32
    %192 = vector.broadcast %cst_95 : f32 to vector<4x64xf32>
    %193 = arith.addf %192, %191 : vector<4x64xf32>
    %194 = arith.divf %192, %193 : vector<4x64xf32>
    %c0_96 = arith.constant 0 : index
    %c0_97 = arith.constant 0 : index
    %195 = vector.load %arg11[%c0_96, %c0_97] : memref<4x64xf32, #tpu.memory_space<vmem>>, vector<4x64xf32>
    %196 = arith.mulf %186, %195 : vector<4x64xf32>
    %197 = arith.mulf %180, %188 : vector<4x64xf32>
    %198 = arith.addf %196, %197 : vector<4x64xf32>
    %199 = math.tanh %198 : vector<4x64xf32>
    %200 = arith.mulf %194, %199 : vector<4x64xf32>
    %c0_98 = arith.constant 0 : index
    %c0_99 = arith.constant 0 : index
    %201 = vector.load %arg11[%c0_98, %c0_99] : memref<4x64xf32, #tpu.memory_space<vmem>>, vector<4x64xf32>
    tpu.vector_store %arg11[%c0_98, %c0_99], %198 {strides = array<i32>} : memref<4x64xf32, #tpu.memory_space<vmem>>, vector<4x64xf32>,
    %c0_100 = arith.constant 0 : index
    %c0_101 = arith.constant 0 : index
    %202 = vector.load %arg10[%c0_100, %c0_101] : memref<4x64xf32, #tpu.memory_space<vmem>>, vector<4x64xf32>
    tpu.vector_store %arg10[%c0_100, %c0_101], %200 {strides = array<i32>} : memref<4x64xf32, #tpu.memory_space<vmem>>, vector<4x64xf32>,
    %203 = arith.index_cast %c4_i32 : i32 to index
    %c0_102 = arith.constant 0 : index
    %c0_103 = arith.constant 0 : index
    %204 = vector.load %arg12[%203, %c0_102, %c0_103] : memref<8x4x64xf32, #tpu.memory_space<vmem>>, vector<1x4x64xf32>
    %205 = vector.shape_cast %204 : vector<1x4x64xf32> to vector<4x64xf32>
    %206 = vector.shape_cast %200 : vector<4x64xf32> to vector<1x4x64xf32>
    tpu.vector_store %arg12[%203, %c0_102, %c0_103], %206 {strides = array<i32>} : memref<8x4x64xf32, #tpu.memory_space<vmem>>, vector<1x4x64xf32>,
    %c5_i32 = arith.constant 5 : i32
    %207 = arith.index_cast %c5_i32 : i32 to index
    %c0_104 = arith.constant 0 : index
    %c0_105 = arith.constant 0 : index
    %208 = vector.load %arg9[%207, %c0_104, %c0_105] : memref<8x4x256xf32, #tpu.memory_space<vmem>>, vector<1x4x256xf32>
    %209 = vector.shape_cast %208 : vector<1x4x256xf32> to vector<4x256xf32>
    %c0_106 = arith.constant 0 : index
    %c0_107 = arith.constant 0 : index
    %210 = vector.load %arg10[%c0_106, %c0_107] : memref<4x64xf32, #tpu.memory_space<vmem>>, vector<4x64xf32>
    %c0_108 = arith.constant 0 : index
    %c0_109 = arith.constant 0 : index
    %211 = vector.load %arg3[%c0_108, %c0_109] : memref<64x256xf32, #tpu.memory_space<vmem>>, vector<64x256xf32>
    %cst_110 = arith.constant dense<0.000000e+00> : vector<4x256xf32>
    %212 = tpu.matmul %210, %211, %cst_110 {dimension_numbers = #tpu.dot_dimension_numbers<[1], [0], [0], [1], [0, 0, 1, 1], [], []>} : vector<4x64xf32>, vector<64x256xf32>, vector<4x256xf32> -> vector<4x256xf32>
    %213 = arith.addf %209, %212 : vector<4x256xf32>
    %214 = vector.extract_strided_slice %213 {offsets = [0, 0], sizes = [4, 64], strides = [1, 1]} : vector<4x256xf32> to vector<4x64xf32>
    %215 = arith.negf %214 : vector<4x64xf32>
    %216 = math.exp %215 : vector<4x64xf32>
    %cst_111 = arith.constant 1.000000e+00 : f32
    %217 = vector.broadcast %cst_111 : f32 to vector<4x64xf32>
    %218 = arith.addf %217, %216 : vector<4x64xf32>
    %219 = arith.divf %217, %218 : vector<4x64xf32>
    %220 = vector.extract_strided_slice %213 {offsets = [0, 64], sizes = [4, 64], strides = [1, 1]} : vector<4x256xf32> to vector<4x64xf32>
    %221 = arith.negf %220 : vector<4x64xf32>
    %222 = math.exp %221 : vector<4x64xf32>
    %cst_112 = arith.constant 1.000000e+00 : f32
    %223 = vector.broadcast %cst_112 : f32 to vector<4x64xf32>
    %224 = arith.addf %223, %222 : vector<4x64xf32>
    %225 = arith.divf %223, %224 : vector<4x64xf32>
    %226 = vector.extract_strided_slice %213 {offsets = [0, 128], sizes = [4, 64], strides = [1, 1]} : vector<4x256xf32> to vector<4x64xf32>
    %227 = math.tanh %226 : vector<4x64xf32>
    %228 = vector.extract_strided_slice %213 {offsets = [0, 192], sizes = [4, 64], strides = [1, 1]} : vector<4x256xf32> to vector<4x64xf32>
    %229 = arith.negf %228 : vector<4x64xf32>
    %230 = math.exp %229 : vector<4x64xf32>
    %cst_113 = arith.constant 1.000000e+00 : f32
    %231 = vector.broadcast %cst_113 : f32 to vector<4x64xf32>
    %232 = arith.addf %231, %230 : vector<4x64xf32>
    %233 = arith.divf %231, %232 : vector<4x64xf32>
    %c0_114 = arith.constant 0 : index
    %c0_115 = arith.constant 0 : index
    %234 = vector.load %arg11[%c0_114, %c0_115] : memref<4x64xf32, #tpu.memory_space<vmem>>, vector<4x64xf32>
    %235 = arith.mulf %225, %234 : vector<4x64xf32>
    %236 = arith.mulf %219, %227 : vector<4x64xf32>
    %237 = arith.addf %235, %236 : vector<4x64xf32>
    %238 = math.tanh %237 : vector<4x64xf32>
    %239 = arith.mulf %233, %238 : vector<4x64xf32>
    %c0_116 = arith.constant 0 : index
    %c0_117 = arith.constant 0 : index
    %240 = vector.load %arg11[%c0_116, %c0_117] : memref<4x64xf32, #tpu.memory_space<vmem>>, vector<4x64xf32>
    tpu.vector_store %arg11[%c0_116, %c0_117], %237 {strides = array<i32>} : memref<4x64xf32, #tpu.memory_space<vmem>>, vector<4x64xf32>,
    %c0_118 = arith.constant 0 : index
    %c0_119 = arith.constant 0 : index
    %241 = vector.load %arg10[%c0_118, %c0_119] : memref<4x64xf32, #tpu.memory_space<vmem>>, vector<4x64xf32>
    tpu.vector_store %arg10[%c0_118, %c0_119], %239 {strides = array<i32>} : memref<4x64xf32, #tpu.memory_space<vmem>>, vector<4x64xf32>,
    %242 = arith.index_cast %c5_i32 : i32 to index
    %c0_120 = arith.constant 0 : index
    %c0_121 = arith.constant 0 : index
    %243 = vector.load %arg12[%242, %c0_120, %c0_121] : memref<8x4x64xf32, #tpu.memory_space<vmem>>, vector<1x4x64xf32>
    %244 = vector.shape_cast %243 : vector<1x4x64xf32> to vector<4x64xf32>
    %245 = vector.shape_cast %239 : vector<4x64xf32> to vector<1x4x64xf32>
    tpu.vector_store %arg12[%242, %c0_120, %c0_121], %245 {strides = array<i32>} : memref<8x4x64xf32, #tpu.memory_space<vmem>>, vector<1x4x64xf32>,
    %c6_i32 = arith.constant 6 : i32
    %246 = arith.index_cast %c6_i32 : i32 to index
    %c0_122 = arith.constant 0 : index
    %c0_123 = arith.constant 0 : index
    %247 = vector.load %arg9[%246, %c0_122, %c0_123] : memref<8x4x256xf32, #tpu.memory_space<vmem>>, vector<1x4x256xf32>
    %248 = vector.shape_cast %247 : vector<1x4x256xf32> to vector<4x256xf32>
    %c0_124 = arith.constant 0 : index
    %c0_125 = arith.constant 0 : index
    %249 = vector.load %arg10[%c0_124, %c0_125] : memref<4x64xf32, #tpu.memory_space<vmem>>, vector<4x64xf32>
    %c0_126 = arith.constant 0 : index
    %c0_127 = arith.constant 0 : index
    %250 = vector.load %arg3[%c0_126, %c0_127] : memref<64x256xf32, #tpu.memory_space<vmem>>, vector<64x256xf32>
    %cst_128 = arith.constant dense<0.000000e+00> : vector<4x256xf32>
    %251 = tpu.matmul %249, %250, %cst_128 {dimension_numbers = #tpu.dot_dimension_numbers<[1], [0], [0], [1], [0, 0, 1, 1], [], []>} : vector<4x64xf32>, vector<64x256xf32>, vector<4x256xf32> -> vector<4x256xf32>
    %252 = arith.addf %248, %251 : vector<4x256xf32>
    %253 = vector.extract_strided_slice %252 {offsets = [0, 0], sizes = [4, 64], strides = [1, 1]} : vector<4x256xf32> to vector<4x64xf32>
    %254 = arith.negf %253 : vector<4x64xf32>
    %255 = math.exp %254 : vector<4x64xf32>
    %cst_129 = arith.constant 1.000000e+00 : f32
    %256 = vector.broadcast %cst_129 : f32 to vector<4x64xf32>
    %257 = arith.addf %256, %255 : vector<4x64xf32>
    %258 = arith.divf %256, %257 : vector<4x64xf32>
    %259 = vector.extract_strided_slice %252 {offsets = [0, 64], sizes = [4, 64], strides = [1, 1]} : vector<4x256xf32> to vector<4x64xf32>
    %260 = arith.negf %259 : vector<4x64xf32>
    %261 = math.exp %260 : vector<4x64xf32>
    %cst_130 = arith.constant 1.000000e+00 : f32
    %262 = vector.broadcast %cst_130 : f32 to vector<4x64xf32>
    %263 = arith.addf %262, %261 : vector<4x64xf32>
    %264 = arith.divf %262, %263 : vector<4x64xf32>
    %265 = vector.extract_strided_slice %252 {offsets = [0, 128], sizes = [4, 64], strides = [1, 1]} : vector<4x256xf32> to vector<4x64xf32>
    %266 = math.tanh %265 : vector<4x64xf32>
    %267 = vector.extract_strided_slice %252 {offsets = [0, 192], sizes = [4, 64], strides = [1, 1]} : vector<4x256xf32> to vector<4x64xf32>
    %268 = arith.negf %267 : vector<4x64xf32>
    %269 = math.exp %268 : vector<4x64xf32>
    %cst_131 = arith.constant 1.000000e+00 : f32
    %270 = vector.broadcast %cst_131 : f32 to vector<4x64xf32>
    %271 = arith.addf %270, %269 : vector<4x64xf32>
    %272 = arith.divf %270, %271 : vector<4x64xf32>
    %c0_132 = arith.constant 0 : index
    %c0_133 = arith.constant 0 : index
    %273 = vector.load %arg11[%c0_132, %c0_133] : memref<4x64xf32, #tpu.memory_space<vmem>>, vector<4x64xf32>
    %274 = arith.mulf %264, %273 : vector<4x64xf32>
    %275 = arith.mulf %258, %266 : vector<4x64xf32>
    %276 = arith.addf %274, %275 : vector<4x64xf32>
    %277 = math.tanh %276 : vector<4x64xf32>
    %278 = arith.mulf %272, %277 : vector<4x64xf32>
    %c0_134 = arith.constant 0 : index
    %c0_135 = arith.constant 0 : index
    %279 = vector.load %arg11[%c0_134, %c0_135] : memref<4x64xf32, #tpu.memory_space<vmem>>, vector<4x64xf32>
    tpu.vector_store %arg11[%c0_134, %c0_135], %276 {strides = array<i32>} : memref<4x64xf32, #tpu.memory_space<vmem>>, vector<4x64xf32>,
    %c0_136 = arith.constant 0 : index
    %c0_137 = arith.constant 0 : index
    %280 = vector.load %arg10[%c0_136, %c0_137] : memref<4x64xf32, #tpu.memory_space<vmem>>, vector<4x64xf32>
    tpu.vector_store %arg10[%c0_136, %c0_137], %278 {strides = array<i32>} : memref<4x64xf32, #tpu.memory_space<vmem>>, vector<4x64xf32>,
    %281 = arith.index_cast %c6_i32 : i32 to index
    %c0_138 = arith.constant 0 : index
    %c0_139 = arith.constant 0 : index
    %282 = vector.load %arg12[%281, %c0_138, %c0_139] : memref<8x4x64xf32, #tpu.memory_space<vmem>>, vector<1x4x64xf32>
    %283 = vector.shape_cast %282 : vector<1x4x64xf32> to vector<4x64xf32>
    %284 = vector.shape_cast %278 : vector<4x64xf32> to vector<1x4x64xf32>
    tpu.vector_store %arg12[%281, %c0_138, %c0_139], %284 {strides = array<i32>} : memref<8x4x64xf32, #tpu.memory_space<vmem>>, vector<1x4x64xf32>,
    %c7_i32 = arith.constant 7 : i32
    %285 = arith.index_cast %c7_i32 : i32 to index
    %c0_140 = arith.constant 0 : index
    %c0_141 = arith.constant 0 : index
    %286 = vector.load %arg9[%285, %c0_140, %c0_141] : memref<8x4x256xf32, #tpu.memory_space<vmem>>, vector<1x4x256xf32>
    %287 = vector.shape_cast %286 : vector<1x4x256xf32> to vector<4x256xf32>
    %c0_142 = arith.constant 0 : index
    %c0_143 = arith.constant 0 : index
    %288 = vector.load %arg10[%c0_142, %c0_143] : memref<4x64xf32, #tpu.memory_space<vmem>>, vector<4x64xf32>
    %c0_144 = arith.constant 0 : index
    %c0_145 = arith.constant 0 : index
    %289 = vector.load %arg3[%c0_144, %c0_145] : memref<64x256xf32, #tpu.memory_space<vmem>>, vector<64x256xf32>
    %cst_146 = arith.constant dense<0.000000e+00> : vector<4x256xf32>
    %290 = tpu.matmul %288, %289, %cst_146 {dimension_numbers = #tpu.dot_dimension_numbers<[1], [0], [0], [1], [0, 0, 1, 1], [], []>} : vector<4x64xf32>, vector<64x256xf32>, vector<4x256xf32> -> vector<4x256xf32>
    %291 = arith.addf %287, %290 : vector<4x256xf32>
    %292 = vector.extract_strided_slice %291 {offsets = [0, 0], sizes = [4, 64], strides = [1, 1]} : vector<4x256xf32> to vector<4x64xf32>
    %293 = arith.negf %292 : vector<4x64xf32>
    %294 = math.exp %293 : vector<4x64xf32>
    %cst_147 = arith.constant 1.000000e+00 : f32
    %295 = vector.broadcast %cst_147 : f32 to vector<4x64xf32>
    %296 = arith.addf %295, %294 : vector<4x64xf32>
    %297 = arith.divf %295, %296 : vector<4x64xf32>
    %298 = vector.extract_strided_slice %291 {offsets = [0, 64], sizes = [4, 64], strides = [1, 1]} : vector<4x256xf32> to vector<4x64xf32>
    %299 = arith.negf %298 : vector<4x64xf32>
    %300 = math.exp %299 : vector<4x64xf32>
    %cst_148 = arith.constant 1.000000e+00 : f32
    %301 = vector.broadcast %cst_148 : f32 to vector<4x64xf32>
    %302 = arith.addf %301, %300 : vector<4x64xf32>
    %303 = arith.divf %301, %302 : vector<4x64xf32>
    %304 = vector.extract_strided_slice %291 {offsets = [0, 128], sizes = [4, 64], strides = [1, 1]} : vector<4x256xf32> to vector<4x64xf32>
    %305 = math.tanh %304 : vector<4x64xf32>
    %306 = vector.extract_strided_slice %291 {offsets = [0, 192], sizes = [4, 64], strides = [1, 1]} : vector<4x256xf32> to vector<4x64xf32>
    %307 = arith.negf %306 : vector<4x64xf32>
    %308 = math.exp %307 : vector<4x64xf32>
    %cst_149 = arith.constant 1.000000e+00 : f32
    %309 = vector.broadcast %cst_149 : f32 to vector<4x64xf32>
    %310 = arith.addf %309, %308 : vector<4x64xf32>
    %311 = arith.divf %309, %310 : vector<4x64xf32>
    %c0_150 = arith.constant 0 : index
    %c0_151 = arith.constant 0 : index
    %312 = vector.load %arg11[%c0_150, %c0_151] : memref<4x64xf32, #tpu.memory_space<vmem>>, vector<4x64xf32>
    %313 = arith.mulf %303, %312 : vector<4x64xf32>
    %314 = arith.mulf %297, %305 : vector<4x64xf32>
    %315 = arith.addf %313, %314 : vector<4x64xf32>
    %316 = math.tanh %315 : vector<4x64xf32>
    %317 = arith.mulf %311, %316 : vector<4x64xf32>
    %c0_152 = arith.constant 0 : index
    %c0_153 = arith.constant 0 : index
    %318 = vector.load %arg11[%c0_152, %c0_153] : memref<4x64xf32, #tpu.memory_space<vmem>>, vector<4x64xf32>
    tpu.vector_store %arg11[%c0_152, %c0_153], %315 {strides = array<i32>} : memref<4x64xf32, #tpu.memory_space<vmem>>, vector<4x64xf32>,
    %c0_154 = arith.constant 0 : index
    %c0_155 = arith.constant 0 : index
    %319 = vector.load %arg10[%c0_154, %c0_155] : memref<4x64xf32, #tpu.memory_space<vmem>>, vector<4x64xf32>
    tpu.vector_store %arg10[%c0_154, %c0_155], %317 {strides = array<i32>} : memref<4x64xf32, #tpu.memory_space<vmem>>, vector<4x64xf32>,
    %320 = arith.index_cast %c7_i32 : i32 to index
    %c0_156 = arith.constant 0 : index
    %c0_157 = arith.constant 0 : index
    %321 = vector.load %arg12[%320, %c0_156, %c0_157] : memref<8x4x64xf32, #tpu.memory_space<vmem>>, vector<1x4x64xf32>
    %322 = vector.shape_cast %321 : vector<1x4x64xf32> to vector<4x64xf32>
    %323 = vector.shape_cast %317 : vector<4x64xf32> to vector<1x4x64xf32>
    tpu.vector_store %arg12[%320, %c0_156, %c0_157], %323 {strides = array<i32>} : memref<8x4x64xf32, #tpu.memory_space<vmem>>, vector<1x4x64xf32>,
    %c8_i32 = arith.constant 8 : i32
    %c0_158 = arith.constant 0 : index
    %c0_159 = arith.constant 0 : index
    %c0_160 = arith.constant 0 : index
    %324 = vector.load %arg12[%c0_158, %c0_159, %c0_160] : memref<8x4x64xf32, #tpu.memory_space<vmem>>, vector<8x4x64xf32>
    %325 = vector.extract_strided_slice %324 {offsets = [0, 0, 0], sizes = [8, 2, 64], strides = [1, 1, 1]} : vector<8x4x64xf32> to vector<8x2x64xf32>
    %326 = vector.shape_cast %325 : vector<8x2x64xf32> to vector<16x64xf32>
    %327 = vector.extract_strided_slice %324 {offsets = [0, 2, 0], sizes = [8, 2, 64], strides = [1, 1, 1]} : vector<8x4x64xf32> to vector<8x2x64xf32>
    %328 = vector.shape_cast %327 : vector<8x2x64xf32> to vector<16x64xf32>
    %c0_161 = arith.constant 0 : index
    %c0_162 = arith.constant 0 : index
    %329 = vector.load %arg5[%c0_161, %c0_162] : memref<64x32xf32, #tpu.memory_space<vmem>>, vector<64x32xf32>
    %cst_163 = arith.constant dense<0.000000e+00> : vector<16x32xf32>
    %330 = tpu.matmul %326, %329, %cst_163 {dimension_numbers = #tpu.dot_dimension_numbers<[1], [0], [0], [1], [0, 0, 1, 1], [], []>} : vector<16x64xf32>, vector<64x32xf32>, vector<16x32xf32> -> vector<16x32xf32>
    %c0_164 = arith.constant 0 : index
    %c0_165 = arith.constant 0 : index
    %331 = vector.load %arg6[%c0_164, %c0_165] : memref<64x32xf32, #tpu.memory_space<vmem>>, vector<64x32xf32>
    %cst_166 = arith.constant dense<0.000000e+00> : vector<16x32xf32>
    %332 = tpu.matmul %328, %331, %cst_166 {dimension_numbers = #tpu.dot_dimension_numbers<[1], [0], [0], [1], [0, 0, 1, 1], [], []>} : vector<16x64xf32>, vector<64x32xf32>, vector<16x32xf32> -> vector<16x32xf32>
    %333 = arith.addf %330, %332 : vector<16x32xf32>
    %c0_167 = arith.constant 0 : index
    %c0_168 = arith.constant 0 : index
    %334 = vector.load %arg7[%c0_167, %c0_168] : memref<1x32xf32, #tpu.memory_space<vmem>>, vector<1x32xf32>
    %335 = vector.broadcast %334 : vector<1x32xf32> to vector<16x32xf32>
    %336 = arith.addf %333, %335 : vector<16x32xf32>
    %c0_169 = arith.constant 0 : index
    %c0_170 = arith.constant 0 : index
    %337 = vector.load %arg8[%c0_169, %c0_170] : memref<16x32xf32, #tpu.memory_space<vmem>>, vector<16x32xf32>
    tpu.vector_store %arg8[%c0_169, %c0_170], %336 {strides = array<i32>} : memref<16x32xf32, #tpu.memory_space<vmem>>, vector<16x32xf32>,
    return
  }
  func.func @transform_0(%arg0: i32) -> (i32, i32) {
    %c0_i32 = arith.constant 0 : i32
    %c0_i32_0 = arith.constant 0 : i32
    %c0_i32_1 = arith.constant 0 : i32
    return %c0_i32, %c0_i32_0 : i32, i32
  }
  func.func @transform_1(%arg0: i32) -> (i32, i32) {
    %c0_i32 = arith.constant 0 : i32
    %c0_i32_0 = arith.constant 0 : i32
    %c0_i32_1 = arith.constant 0 : i32
    return %c0_i32, %c0_i32_0 : i32, i32
  }
  func.func @transform_2(%arg0: i32) -> (i32, i32) {
    %c0_i32 = arith.constant 0 : i32
    %c0_i32_0 = arith.constant 0 : i32
    %c0_i32_1 = arith.constant 0 : i32
    return %c0_i32, %c0_i32_0 : i32, i32
  }
  func.func @transform_3(%arg0: i32) -> (i32, i32) {
    %c0_i32 = arith.constant 0 : i32
    %c0_i32_0 = arith.constant 0 : i32
    %c0_i32_1 = arith.constant 0 : i32
    return %c0_i32, %c0_i32_0 : i32, i32
  }
  func.func @transform_4(%arg0: i32) -> (i32, i32) {
    %c0_i32 = arith.constant 0 : i32
    %c0_i32_0 = arith.constant 0 : i32
    %c0_i32_1 = arith.constant 0 : i32
    return %c0_i32, %c0_i32_0 : i32, i32
  }
  func.func @transform_5(%arg0: i32) -> (i32, i32) {
    %c0_i32 = arith.constant 0 : i32
    %c0_i32_0 = arith.constant 0 : i32
    %c0_i32_1 = arith.constant 0 : i32
    return %c0_i32, %c0_i32_0 : i32, i32
  }
  func.func @transform_6(%arg0: i32) -> (i32, i32) {
    %c0_i32 = arith.constant 0 : i32
    %c0_i32_0 = arith.constant 0 : i32
    %c0_i32_1 = arith.constant 0 : i32
    return %c0_i32, %c0_i32_0 : i32, i32
  }
  func.func @transform_7(%arg0: i32) -> (i32, i32) {
    %c0_i32 = arith.constant 0 : i32
    %c0_i32_0 = arith.constant 0 : i32
    %c0_i32_1 = arith.constant 0 : i32
    return %c0_i32, %c0_i32_0 : i32, i32
  }
}

</mosaic_0001>

<bundles_post_ra>
// kernel: complex_lstm_forward.1
= control target key start
LH: loop header
LB: loop body
LE: loop exit
PB: predicated region body
PF: predicated region fallthrough
CT: control target
= control target key end

     0   :  { %vm184_vm0 = vcmask 519168   ;;  %v1871_v3 = vmov 0.0   ;;  %vm50_vm1 = vcmask 261120   ;;  %s1872_s23 = smov 64   ;;  %vm205_vm2 = vcmask 523264   ;;  %s2458_s2 = inlined_call_operand.vmem [shape: f32[64,256], index: 2, kind: input, shape index: {}]   ;;  %s2459_s1 = inlined_call_operand.vmem [shape: f32[32,256], index: 1, kind: input, shape index: {}]   ;;  %s2460_s0 = inlined_call_operand.vmem [shape: f32[32,32], index: 0, kind: input, shape index: {}]   ;;  %s2461_s3 = inlined_call_operand.vmem [shape: f32[1,256], index: 3, kind: input, shape index: {}]   ;;  %s2462_s4 = inlined_call_operand.vmem [shape: f32[64,32], index: 4, kind: input, shape index: {}]   ;;  %s2463_s5 = inlined_call_operand.vmem [shape: f32[64,32], index: 5, kind: input, shape index: {}]   ;;  %s2464_s6 = inlined_call_operand.vmem [shape: f32[1,32], index: 6, kind: input, shape index: {}]   ;;  %s2465_s7 = inlined_call_operand.vmem [shape: f32[16,32], index: 7, kind: output, shape index: {}]  }
   0x1   :  { %v1917_v0 = vld [vmem:[%s2458_s2 + $0x78] sm:$0xff]  ;;  %v1922_v1 = vld [vmem:[%s2458_s2 + $0x70] sm:$0xff]  ;;  %v1927_v2 = vld [vmem:[%s2458_s2 + $0x68] sm:$0xff]  ;;  %127 = vmatprep.mubr.f32.mxu0 %v1871_v3  ;;  %273 = vmatprep.mubr.f32.mxu1 %v1871_v3  ;;  %185 = vst.msk [vmem:[#allocation3] sm:$0xf] %vm184_vm0, %v1871_v3  ;;  %v40_v28 = vlaneseq }
   0x2   :  { %186 = vst.msk [vmem:[#allocation4] sm:$0xf] %vm184_vm0, %v1871_v3  ;;  %225 = vmatprep.subr.mxu1 %v1917_v0  ;;  %v1939_v4 = vld [vmem:[%s2458_s2 + $0x60] sm:$0xff]  ;;  %v37_v5 = vld [vmem:[%s2459_s1 + $0x38] sm:$0xff]  ;;  %v36_v7 = vld [vmem:[%s2459_s1 + $0x30] sm:$0xff] }
   0x3   :  { %226 = vmatpush1.msra.mxu1 %v1922_v1  ;;  %87 = vmatprep.subr.mxu0 %v37_v5  ;;  %v1948_v6 = vld [vmem:[%s2458_s2 + $0x58] sm:$0xff]  ;;  %v35_v8 = vld [vmem:[%s2459_s1 + $0x28] sm:$0xff]  ;;  %v1960_v9 = vld [vmem:[%s2458_s2 + $0x50] sm:$0xff]  ;;  %v2082_v29 = vshrl.u32 %v40_v28, 7 }
   0x4   :  { %227 = vmatprep.subr.mxu1 %v1927_v2  ;;  %88 = vmatpush1.msra.mxu0 %v36_v7  ;;  %v34_v10 = vld [vmem:[%s2459_s1 + $0x20] sm:$0xff]  ;;  %v1969_v11 = vld [vmem:[%s2458_s2 + $0x48] sm:$0xff]  ;;  %v33_v12 = vld [vmem:[%s2459_s1 + $0x18] sm:$0xff] }
   0x5   :  { %228 = vmatpush1.msra.mxu1 %v1939_v4  ;;  %89 = vmatprep.subr.mxu0 %v35_v8  ;;  %v32_v13 = vld [vmem:[%s2459_s1 + $0x10] sm:$0xff]  ;;  %v1981_v14 = vld [vmem:[%s2458_s2 + $0x40] sm:$0xff]  ;;  %v31_v15 = vld [vmem:[%s2459_s1 + $0x8] sm:$0xff]  ;;  %v42_v30 = vsub.s32 0, %v2082_v29  ;;  %v46_v32 = vsub.s32 1, %v2082_v29 }
   0x6   :  { %229 = vmatprep.subr.mxu1 %v1948_v6  ;;  %90 = vmatpush1.msra.mxu0 %v34_v10  ;;  %v1990_v16 = vld [vmem:[%s2458_s2 + $0x38] sm:$0xff]  ;;  %v30_v17 = vld [vmem:[%s2459_s1] sm:$0xff]  ;;  %v1999_v18 = vld [vmem:[%s2458_s2 + $0x30] sm:$0xff] }
   0x7   :  { %230 = vmatpush1.msra.mxu1 %v1960_v9  ;;  %91 = vmatprep.subr.mxu0 %v33_v12  ;;  %v26_v19 = vld [vmem:[%s2460_s0] sm:$0xff]  ;;  %v2008_v20 = vld [vmem:[%s2458_s2 + $0x28] sm:$0xff]  ;;  %v2021_v23 = vld [vmem:[%s2458_s2 + $0x18] sm:$0xff] }
   0x8   :  { %231 = vmatprep.subr.mxu1 %v1969_v11  ;;  %92 = vmatpush1.msra.mxu0 %v32_v13  ;;  %v2014_v22 = vld [vmem:[%s2458_s2 + $0x20] sm:$0xff]  ;;  %v2027_v24 = vld [vmem:[%s2458_s2 + $0x10] sm:$0xff]  ;;  %v2034_v25 = vld [vmem:[%s2458_s2 + $0x8] sm:$0xff] }
   0x9   :  { %232 = vmatpush1.msra.mxu1 %v1981_v14  ;;  %93 = vmatprep.subr.mxu0 %v31_v15  ;;  %v305_v21 = vld [vmem:[#allocation4] sm:$0xf]  ;;  %v188_v27 = vld [vmem:[#allocation3] sm:$0xf]  ;;  %v27_v53 = vld [vmem:[%s2460_s0 + $0x8] sm:$0xff] }
   0xa   :  { %233 = vmatprep.subr.mxu1 %v1990_v16  ;;  %94 = vmatpush1.msra.mxu0 %v30_v17  ;;  %v2041_v26 = vld [vmem:[%s2458_s2] sm:$0xff]  ;;  %v28_v57 = vld [vmem:[%s2460_s0 + $0x10] sm:$0xff]  ;;  %v29_v58 = vld [vmem:[%s2460_s0 + $0x18] sm:$0xff] }
   0xb   :  { %234 = vmatpush1.msra.mxu1 %v1999_v18  ;;  %1675 = vmatmul.mubr.msk.f32.vlgmr.msra.gmra.mxu0 %vm50_vm1, %v26_v19  ;;  %v38_v31 = vld [vmem:[%s2461_s3] sm:$0x3] }
   0xc   :  { %235 = vmatprep.subr.mxu1 %v2008_v20  ;;  %307 = vrot.lane.b32.xlu0 %v305_v21, %s1872_s23  ;;  %v2089_v33 = vrot.slane %v38_v31, %v42_v30  ;;  %v2091_v34 = vrot.slane %v38_v31, %v46_v32 }
   0xd   :  { %236 = vmatpush1.msra.mxu1 %v2014_v22  ;;  %368 = vmatprep.subr.mxu0 %v1917_v0 }
   0xe   :  { %237 = vmatprep.subr.mxu1 %v2021_v23  ;;  %369 = vmatpush1.msra.mxu0 %v1922_v1 }
   0xf   :  { %238 = vmatpush1.msra.mxu1 %v2027_v24  ;;  %133 = vmatprep.mubr.f32.mxu0 %v1871_v3 }
  0x10   :  { %239 = vmatprep.subr.mxu1 %v2034_v25  ;;  %370 = vmatprep.subr.mxu0 %v1927_v2 }
  0x11   :  { %240 = vmatpush1.msra.mxu1 %v2041_v26  ;;  %371 = vmatpush1.msra.mxu0 %v1939_v4 }
  0x12   :  { %1679 = vmatmul.mubr.msk.f32.vlgmr.msra.gmra.mxu1 %vm205_vm2, %v188_v27  ;;  %372 = vmatprep.subr.mxu0 %v1948_v6 }
  0x13   :  { %373 = vmatpush1.msra.mxu0 %v1960_v9  ;;  %512 = vmatprep.subr.mxu1 %v1917_v0 }
  0x14   :  { %374 = vmatprep.subr.mxu0 %v1969_v11  ;;  %513 = vmatpush1.msra.mxu1 %v1922_v1 }
  0x15   :  { %375 = vmatpush1.msra.mxu0 %v1981_v14  ;;  %514 = vmatprep.subr.mxu1 %v1927_v2 }
  0x16   :  { %376 = vmatprep.subr.mxu0 %v1990_v16  ;;  %515 = vmatpush1.msra.mxu1 %v1939_v4 }
  0x17   :  { %377 = vmatpush1.msra.mxu0 %v1999_v18  ;;  %516 = vmatprep.subr.mxu1 %v1948_v6 }
  0x18   :  { %378 = vmatprep.subr.mxu0 %v2008_v20  ;;  %517 = vmatpush1.msra.mxu1 %v1960_v9 }
  0x19   :  { %379 = vmatpush1.msra.mxu0 %v2014_v22  ;;  %518 = vmatprep.subr.mxu1 %v1969_v11 }
  0x1a   :  { %380 = vmatprep.subr.mxu0 %v2021_v23  ;;  %519 = vmatpush1.msra.mxu1 %v1981_v14 }
  0x1b   :  { %381 = vmatpush1.msra.mxu0 %v2027_v24  ;;  %520 = vmatprep.subr.mxu1 %v1990_v16 }
  0x1c   :  { %382 = vmatprep.subr.mxu0 %v2034_v25  ;;  %521 = vmatpush1.msra.mxu1 %v1999_v18 }
  0x1d   :  { %383 = vmatpush1.msra.mxu0 %v2041_v26  ;;  %522 = vmatprep.subr.mxu1 %v2008_v20 }
  0x1e   :  { %523 = vmatpush1.msra.mxu1 %v2014_v22  ;;  %560 = vmatprep.mubr.f32.mxu1 %v1871_v3 }
  0x1f   :  { %524 = vmatprep.subr.mxu1 %v2021_v23  ;;  %656 = vmatprep.subr.mxu0 %v1917_v0 }
  0x20   :  { %525 = vmatpush1.msra.mxu1 %v2027_v24  ;;  %1676 = vmatmul.mubr.msk.f32.gmra.mxu0 %vm50_vm1, %v27_v53 }
  0x21   :  { %526 = vmatprep.subr.mxu1 %v2034_v25  ;;  %139 = vmatprep.mubr.f32.mxu0 %v1871_v3 }
  0x22   :  { %527 = vmatpush1.msra.mxu1 %v2041_v26 }
  0x23   :  { %800 = vmatprep.subr.mxu1 %v1917_v0 }
  0x24   :  { %1677 = vmatmul.mubr.msk.f32.gmra.mxu0 %vm50_vm1, %v28_v57 }
  0x25   :  { %145 = vmatprep.mubr.f32.mxu0 %v1871_v3 }
  0x28   :  { %1678 = vmatmul.mubr.msk.f32.gmra.mxu0 %vm50_vm1, %v29_v58 }
  0x29   :  { %416 = vmatprep.mubr.f32.mxu0 %v1871_v3 }
  0x7e   :  { %v308_v52 = vpop.permute.xlu0 %307 }
  0xcb   :  { %v129_v35 = vpop.f32.mrf.mxu0 }
  0xcc   :  { %v2094_v36 = vadd.f32 %v129_v35, %v2089_v33 }
  0xcd   :  { %v131_v37 = vpop.f32.mrf.mxu0 }
  0xce   :  { %v2097_v38 = vadd.f32 %v131_v37, %v2091_v34 }
  0xd0   :  { %v161_v39 = vcombine.high %v2094_v36, %v2097_v38  ;;  %v160_v42 = vcombine.low %v2094_v36, %v2097_v38 }
  0xd2   :  { %v275_v40 = vpop.f32.mrf.mxu1 }
  0xd4   :  { %v277_v41 = vpop.f32.mrf.mxu1 }
  0xd5   :  { %v282_v43 = vcombine.low %v275_v40, %v277_v41 }
  0xd7   :  { %v284_v44 = vadd.f32 %v282_v43, %v160_v42 }
  0xd9   :  { %v1680_v45 = vmul.f32 -1.442695, %v284_v44  ;;  %295 = vrot.lane.b32.xlu1 %v284_v44, %s1872_s23  ;;  %v292_v46 = vrot.slane %v284_v44, 4 }
  0xdb   :  { %1775 = vpow2.f32 %v1680_v45 }
  0xdc   :  { %1777 = vtanh.f32 %v292_v46 }
  0xe0   :  { %v135_v17 = vpop.f32.mrf.mxu0 }
  0xe1   :  { %v2145_v19 = vadd.f32 %v135_v17, %v2089_v33 }
  0xe2   :  { %v137_v21 = vpop.f32.mrf.mxu0 }
  0xe3   :  { %v2148_v27 = vadd.f32 %v137_v21, %v2091_v34 }
  0xe4   :  { %v141_v31 = vpop.f32.mrf.mxu0 }
  0xe5   :  { %v162_v28 = vcombine.low %v2145_v19, %v2148_v27  ;;  %v163_v30 = vcombine.high %v2145_v19, %v2148_v27  ;;  %v2155_v32 = vadd.f32 %v141_v31, %v2089_v33 }
  0xe6   :  { %v143_v35 = vpop.f32.mrf.mxu0 }
  0xe7   :  { %v2158_v37 = vadd.f32 %v143_v35, %v2091_v34 }
  0xe8   :  { %v1776_v47 = vpop.eup %1775  ;;  %v147_v40 = vpop.f32.mrf.mxu0 }
  0xe9   :  { %v288_v48 = vadd.f32 1.0, %v1776_v47  ;;  %v1778_v49 = vpop.eup %1777  ;;  %v164_v41 = vcombine.low %v2155_v32, %v2158_v37  ;;  %v165_v42 = vcombine.high %v2155_v32, %v2158_v37  ;;  %v2165_v43 = vadd.f32 %v147_v40, %v2089_v33 }
  0xea   :  { %v149_v44 = vpop.f32.mrf.mxu0 }
  0xeb   :  { %1779 = vrcp.f32 %v288_v48  ;;  %v2168_v45 = vadd.f32 %v149_v44, %v2091_v34 }
  0xed   :  { %v167_v46 = vcombine.high %v2165_v43, %v2168_v45 }
  0xf8   :  { %v1780_v50 = vpop.eup %1779 }
  0xf9   :  { %v311_v51 = vmul.f32 %v1780_v50, %v1778_v49  ;;  %v310_v54 = vmul.f32 %v1780_v50, %v308_v52 }
  0xfb   :  { %313 = vrot.lane.b32.xlu0 %v311_v51, %s1872_s23 }
 0x14b   :  { %v296_v60 = vpop.permute.xlu1 %295 }
 0x14c   :  { %v297_v61 = vrot.slane %v296_v60, 4 }
 0x14e   :  { %v1681_v62 = vmul.f32 -1.442695, %v297_v61 }
 0x16d   :  { %v314_v55 = vpop.permute.xlu0 %313 }
 0x16e   :  { %v316_v56 = vadd.f32 %v314_v55, %v310_v54 }
 0x170   :  { %1781 = vtanh.f32 %v316_v56  ;;  %324 = vrot.lane.b32.xlu0 %v316_v56, %s1872_s23 }
 0x171   :  { %1783 = vpow2.f32 %v1681_v62 }
 0x17d   :  { %v1782_v59 = vpop.eup %1781 }
 0x17e   :  { %319 = vrot.lane.b32.xlu1 %v1782_v59, %s1872_s23  ;;  %v1784_v63 = vpop.eup %1783 }
 0x17f   :  { %v302_v5 = vadd.f32 1.0, %v1784_v63 }
 0x181   :  { %1785 = vrcp.f32 %v302_v5 }
 0x18e   :  { %v1786_v10 = vpop.eup %1785 }
 0x1e2   :  { %v325_v7 = vpop.permute.xlu0 %324 }
 0x1e3   :  { %327 = vst.msk [vmem:[#allocation4] sm:$0xf] %vm184_vm0, %v325_v7 }
 0x1ea   :  { %v448_v8 = vld [vmem:[#allocation4] sm:$0xf] }
 0x1eb   :  { %450 = vrot.lane.b32.xlu1 %v448_v8, %s1872_s23 }
 0x1f0   :  { %v320_v12 = vpop.permute.xlu1 %319 }
 0x1f1   :  { %v322_v13 = vmul.f32 %v1786_v10, %v320_v12 }
 0x1f3   :  { %328 = vst.msk [vmem:[#allocation3] sm:$0xf] %vm184_vm0, %v322_v13  ;;  %329 = vst.msk [vmem:[#allocation5] sm:$0xf] %vm184_vm0, %v322_v13 }
 0x1fa   :  { %v332_v15 = vld [vmem:[#allocation3] sm:$0xf] }
 0x1fb   :  { %1682 = vmatmul.mubr.msk.f32.vlgmr.msra.gmra.mxu0 %vm205_vm2, %v332_v15 }
 0x1fc   :  { %657 = vmatpush1.msra.mxu0 %v1922_v1  ;;  %704 = vmatprep.mubr.f32.mxu0 %v1871_v3 }
 0x1fd   :  { %658 = vmatprep.subr.mxu0 %v1927_v2 }
 0x1fe   :  { %659 = vmatpush1.msra.mxu0 %v1939_v4 }
 0x1ff   :  { %660 = vmatprep.subr.mxu0 %v1948_v6 }
 0x200   :  { %661 = vmatpush1.msra.mxu0 %v1960_v9 }
 0x201   :  { %662 = vmatprep.subr.mxu0 %v1969_v11 }
 0x202   :  { %663 = vmatpush1.msra.mxu0 %v1981_v14 }
 0x203   :  { %664 = vmatprep.subr.mxu0 %v1990_v16 }
 0x204   :  { %665 = vmatpush1.msra.mxu0 %v1999_v18 }
 0x205   :  { %666 = vmatprep.subr.mxu0 %v2008_v20 }
 0x206   :  { %667 = vmatpush1.msra.mxu0 %v2014_v22 }
 0x207   :  { %668 = vmatprep.subr.mxu0 %v2021_v23 }
 0x208   :  { %669 = vmatpush1.msra.mxu0 %v2027_v24 }
 0x209   :  { %670 = vmatprep.subr.mxu0 %v2034_v25 }
 0x20a   :  { %671 = vmatpush1.msra.mxu0 %v2041_v26 }
 0x20b   :  { %944 = vmatprep.subr.mxu0 %v1917_v0 }
 0x25d   :  { %v451_v56 = vpop.permute.xlu1 %450 }
 0x2bb   :  { %v418_v47 = vpop.f32.mrf.mxu0 }
 0x2bd   :  { %v420_v48 = vpop.f32.mrf.mxu0 }
 0x2be   :  { %v425_v49 = vcombine.low %v418_v47, %v420_v48 }
 0x2c0   :  { %v427_v50 = vadd.f32 %v425_v49, %v161_v39 }
 0x2c2   :  { %v1683_v51 = vmul.f32 -1.442695, %v427_v50  ;;  %438 = vrot.lane.b32.xlu1 %v427_v50, %s1872_s23  ;;  %v435_v33 = vrot.slane %v427_v50, 4 }
 0x2c4   :  { %1787 = vpow2.f32 %v1683_v51 }
 0x2c5   :  { %1789 = vtanh.f32 %v435_v33 }
 0x2d1   :  { %v1788_v52 = vpop.eup %1787 }
 0x2d2   :  { %v431_v53 = vadd.f32 1.0, %v1788_v52  ;;  %v1790_v34 = vpop.eup %1789 }
 0x2d4   :  { %1791 = vrcp.f32 %v431_v53 }
 0x2e1   :  { %v1792_v54 = vpop.eup %1791 }
 0x2e2   :  { %v454_v55 = vmul.f32 %v1792_v54, %v1790_v34  ;;  %v453_v57 = vmul.f32 %v1792_v54, %v451_v56 }
 0x2e4   :  { %456 = vrot.lane.b32.xlu0 %v454_v55, %s1872_s23 }
 0x334   :  { %v439_v38 = vpop.permute.xlu1 %438 }
 0x335   :  { %v440_v39 = vrot.slane %v439_v38, 4 }
 0x337   :  { %v1684_v60 = vmul.f32 -1.442695, %v440_v39 }
 0x356   :  { %v457_v58 = vpop.permute.xlu0 %456 }
 0x357   :  { %v459_v59 = vadd.f32 %v457_v58, %v453_v57 }
 0x359   :  { %1793 = vtanh.f32 %v459_v59  ;;  %467 = vrot.lane.b32.xlu1 %v459_v59, %s1872_s23 }
 0x35a   :  { %1795 = vpow2.f32 %v1684_v60 }
 0x366   :  { %v1794_v36 = vpop.eup %1793 }
 0x367   :  { %462 = vrot.lane.b32.xlu0 %v1794_v36, %s1872_s23  ;;  %v1796_v61 = vpop.eup %1795 }
 0x368   :  { %v445_v62 = vadd.f32 1.0, %v1796_v61 }
 0x36a   :  { %1797 = vrcp.f32 %v445_v62 }
 0x377   :  { %v1798_v7 = vpop.eup %1797 }
 0x3cb   :  { %v468_v63 = vpop.permute.xlu1 %467 }
 0x3cc   :  { %470 = vst.msk [vmem:[#allocation4] sm:$0xf] %vm184_vm0, %v468_v63 }
 0x3d3   :  { %v592_v5 = vld [vmem:[#allocation4] sm:$0xf] }
 0x3d4   :  { %594 = vrot.lane.b32.xlu0 %v592_v5, %s1872_s23 }
 0x3d9   :  { %v463_v8 = vpop.permute.xlu0 %462 }
 0x3da   :  { %v465_v10 = vmul.f32 %v1798_v7, %v463_v8 }
 0x3dc   :  { %471 = vst.msk [vmem:[#allocation3] sm:$0xf] %vm184_vm0, %v465_v10  ;;  %473 = vst.msk [vmem:[#allocation5 + $0x4] sm:$0xf] %vm184_vm0, %v465_v10 }
 0x3e3   :  { %v476_v12 = vld [vmem:[#allocation3] sm:$0xf] }
 0x3e4   :  { %1685 = vmatmul.mubr.msk.f32.vlgmr.msra.gmra.mxu1 %vm205_vm2, %v476_v12 }
 0x3e5   :  { %801 = vmatpush1.msra.mxu1 %v1922_v1  ;;  %848 = vmatprep.mubr.f32.mxu1 %v1871_v3 }
 0x3e6   :  { %802 = vmatprep.subr.mxu1 %v1927_v2 }
 0x3e7   :  { %803 = vmatpush1.msra.mxu1 %v1939_v4 }
 0x3e8   :  { %804 = vmatprep.subr.mxu1 %v1948_v6 }
 0x3e9   :  { %805 = vmatpush1.msra.mxu1 %v1960_v9 }
 0x3ea   :  { %806 = vmatprep.subr.mxu1 %v1969_v11 }
 0x3eb   :  { %807 = vmatpush1.msra.mxu1 %v1981_v14 }
 0x3ec   :  { %808 = vmatprep.subr.mxu1 %v1990_v16 }
 0x3ed   :  { %809 = vmatpush1.msra.mxu1 %v1999_v18 }
 0x3ee   :  { %810 = vmatprep.subr.mxu1 %v2008_v20 }
 0x3ef   :  { %811 = vmatpush1.msra.mxu1 %v2014_v22 }
 0x3f0   :  { %812 = vmatprep.subr.mxu1 %v2021_v23 }
 0x3f1   :  { %813 = vmatpush1.msra.mxu1 %v2027_v24 }
 0x3f2   :  { %814 = vmatprep.subr.mxu1 %v2034_v25 }
 0x3f3   :  { %815 = vmatpush1.msra.mxu1 %v2041_v26 }
 0x3f4   :  { %1088 = vmatprep.subr.mxu1 %v1917_v0 }
 0x446   :  { %v595_v0 = vpop.permute.xlu0 %594 }
 0x4a4   :  { %v562_v13 = vpop.f32.mrf.mxu1 }
 0x4a6   :  { %v564_v15 = vpop.f32.mrf.mxu1 }
 0x4a7   :  { %v569_v17 = vcombine.low %v562_v13, %v564_v15 }
 0x4a9   :  { %v571_v21 = vadd.f32 %v569_v17, %v162_v28 }
 0x4ab   :  { %v1686_v31 = vmul.f32 -1.442695, %v571_v21  ;;  %582 = vrot.lane.b32.xlu0 %v571_v21, %s1872_s23  ;;  %v579_v35 = vrot.slane %v571_v21, 4 }
 0x4ad   :  { %1799 = vpow2.f32 %v1686_v31 }
 0x4ae   :  { %1801 = vtanh.f32 %v579_v35 }
 0x4ba   :  { %v1800_v40 = vpop.eup %1799 }
 0x4bb   :  { %v575_v44 = vadd.f32 1.0, %v1800_v40  ;;  %v1802_v47 = vpop.eup %1801 }
 0x4bd   :  { %1803 = vrcp.f32 %v575_v44 }
 0x4ca   :  { %v1804_v48 = vpop.eup %1803 }
 0x4cb   :  { %v598_v49 = vmul.f32 %v1804_v48, %v1802_v47  ;;  %v597_v50 = vmul.f32 %v1804_v48, %v595_v0 }
 0x4cd   :  { %600 = vrot.lane.b32.xlu1 %v598_v49, %s1872_s23 }
 0x51d   :  { %v583_v52 = vpop.permute.xlu0 %582 }
 0x51e   :  { %v584_v53 = vrot.slane %v583_v52, 4 }
 0x520   :  { %v1687_v34 = vmul.f32 -1.442695, %v584_v53  ;;  %v2242_v53 = vld [vmem:[#allocation5] sm:$0xf] }
 0x53f   :  { %v601_v51 = vpop.permute.xlu1 %600 }
 0x540   :  { %v603_v33 = vadd.f32 %v601_v51, %v597_v50  ;;  %v1873_v51 = vmov 1983009808  }
 0x542   :  { %1805 = vtanh.f32 %v603_v33  ;;  %611 = vrot.lane.b32.xlu0 %v603_v33, %s1872_s23  ;;  %v1355_v33 = vunpack.c.l.s4 %v1873_v51 }
 0x543   :  { %1807 = vpow2.f32 %v1687_v34 }
 0x544   :  { %v1356_v52 = vunpack.c.0.s8 %v1355_v33 }
 0x54f   :  { %v1806_v28 = vpop.eup %1805 }
 0x550   :  { %606 = vrot.lane.b32.xlu1 %v1806_v28, %s1872_s23  ;;  %v1808_v54 = vpop.eup %1807  ;;  %v2240_v28 = vld [vmem:[#allocation5 + $0x4] sm:$0xf] }
 0x551   :  { %v589_v55 = vadd.f32 1.0, %v1808_v54  ;;  %v1547_v34 = vcombine.low %v2242_v53, %v2240_v28 }
 0x553   :  { %1809 = vrcp.f32 %v589_v55 }
 0x560   :  { %v1810_v58 = vpop.eup %1809 }
 0x5b4   :  { %v612_v56 = vpop.permute.xlu0 %611 }
 0x5b5   :  { %614 = vst.msk [vmem:[#allocation4] sm:$0xf] %vm184_vm0, %v612_v56 }
 0x5bc   :  { %v736_v57 = vld [vmem:[#allocation4] sm:$0xf] }
 0x5bd   :  { %738 = vrot.lane.b32.xlu1 %v736_v57, %s1872_s23  ;;  %v2251_v57 = vsub.s32 %v1356_v52, %v2082_v29 }
 0x5c2   :  { %v607_v59 = vpop.permute.xlu1 %606 }
 0x5c3   :  { %v609_v36 = vmul.f32 %v1810_v58, %v607_v59  ;;  %v2260_v59 = vrot.slane %v1547_v34, %v2251_v57 }
 0x5c5   :  { %615 = vst.msk [vmem:[#allocation3] sm:$0xf] %vm184_vm0, %v609_v36  ;;  %617 = vst.msk [vmem:[#allocation5 + $0x8] sm:$0xf] %vm184_vm0, %v609_v36 }
 0x5cc   :  { %v620_v38 = vld [vmem:[#allocation3] sm:$0xf]  ;;  %v2246_v55 = vld [vmem:[#allocation5 + $0x8] sm:$0xf] }
 0x5cd   :  { %1688 = vmatmul.mubr.msk.f32.vlgmr.msra.gmra.mxu0 %vm205_vm2, %v620_v38 }
 0x5ce   :  { %945 = vmatpush1.msra.mxu0 %v1922_v1  ;;  %992 = vmatprep.mubr.f32.mxu0 %v1871_v3 }
 0x5cf   :  { %946 = vmatprep.subr.mxu0 %v1927_v2 }
 0x5d0   :  { %947 = vmatpush1.msra.mxu0 %v1939_v4 }
 0x5d1   :  { %948 = vmatprep.subr.mxu0 %v1948_v6 }
 0x5d2   :  { %949 = vmatpush1.msra.mxu0 %v1960_v9 }
 0x5d3   :  { %950 = vmatprep.subr.mxu0 %v1969_v11 }
 0x5d4   :  { %951 = vmatpush1.msra.mxu0 %v1981_v14 }
 0x5d5   :  { %952 = vmatprep.subr.mxu0 %v1990_v16 }
 0x5d6   :  { %953 = vmatpush1.msra.mxu0 %v1999_v18 }
 0x5d7   :  { %954 = vmatprep.subr.mxu0 %v2008_v20 }
 0x5d8   :  { %955 = vmatpush1.msra.mxu0 %v2014_v22 }
 0x5d9   :  { %956 = vmatprep.subr.mxu0 %v2021_v23 }
 0x5da   :  { %957 = vmatpush1.msra.mxu0 %v2027_v24 }
 0x5db   :  { %958 = vmatprep.subr.mxu0 %v2034_v25 }
 0x5dc   :  { %959 = vmatpush1.msra.mxu0 %v2041_v26 }
 0x62f   :  { %v739_v15 = vpop.permute.xlu1 %738 }
 0x68d   :  { %v706_v39 = vpop.f32.mrf.mxu0 }
 0x68f   :  { %v708_v60 = vpop.f32.mrf.mxu0 }
 0x690   :  { %v713_v61 = vcombine.low %v706_v39, %v708_v60 }
 0x692   :  { %v715_v62 = vadd.f32 %v713_v61, %v163_v30 }
 0x694   :  { %v1689_v63 = vmul.f32 -1.442695, %v715_v62  ;;  %726 = vrot.lane.b32.xlu1 %v715_v62, %s1872_s23  ;;  %v723_v5 = vrot.slane %v715_v62, 4 }
 0x696   :  { %1811 = vpow2.f32 %v1689_v63 }
 0x697   :  { %1813 = vtanh.f32 %v723_v5 }
 0x6a3   :  { %v1812_v7 = vpop.eup %1811 }
 0x6a4   :  { %v719_v8 = vadd.f32 1.0, %v1812_v7  ;;  %v1814_v10 = vpop.eup %1813 }
 0x6a6   :  { %1815 = vrcp.f32 %v719_v8 }
 0x6b3   :  { %v1816_v12 = vpop.eup %1815 }
 0x6b4   :  { %v742_v13 = vmul.f32 %v1816_v12, %v1814_v10  ;;  %v741_v17 = vmul.f32 %v1816_v12, %v739_v15 }
 0x6b6   :  { %744 = vrot.lane.b32.xlu0 %v742_v13, %s1872_s23 }
 0x706   :  { %v727_v27 = vpop.permute.xlu1 %726 }
 0x707   :  { %v728_v30 = vrot.slane %v727_v27, 4 }
 0x709   :  { %v1690_v35 = vmul.f32 -1.442695, %v728_v30 }
 0x728   :  { %v745_v21 = vpop.permute.xlu0 %744 }
 0x729   :  { %v747_v31 = vadd.f32 %v745_v21, %v741_v17 }
 0x72b   :  { %1817 = vtanh.f32 %v747_v31  ;;  %755 = vrot.lane.b32.xlu1 %v747_v31, %s1872_s23 }
 0x72c   :  { %1819 = vpow2.f32 %v1690_v35 }
 0x738   :  { %v1818_v19 = vpop.eup %1817 }
 0x739   :  { %750 = vrot.lane.b32.xlu0 %v1818_v19, %s1872_s23  ;;  %v1820_v40 = vpop.eup %1819 }
 0x73a   :  { %v733_v44 = vadd.f32 1.0, %v1820_v40 }
 0x73c   :  { %1821 = vrcp.f32 %v733_v44 }
 0x749   :  { %v1822_v49 = vpop.eup %1821 }
 0x79d   :  { %v756_v47 = vpop.permute.xlu1 %755 }
 0x79e   :  { %758 = vst.msk [vmem:[#allocation4] sm:$0xf] %vm184_vm0, %v756_v47 }
 0x7a5   :  { %v880_v48 = vld [vmem:[#allocation4] sm:$0xf] }
 0x7a6   :  { %882 = vrot.lane.b32.xlu0 %v880_v48, %s1872_s23 }
 0x7ab   :  { %v751_v0 = vpop.permute.xlu0 %750 }
 0x7ac   :  { %v753_v50 = vmul.f32 %v1822_v49, %v751_v0 }
 0x7ae   :  { %759 = vst.msk [vmem:[#allocation3] sm:$0xf] %vm184_vm0, %v753_v50  ;;  %761 = vst.msk [vmem:[#allocation5 + $0xc] sm:$0xf] %vm184_vm0, %v753_v50 }
 0x7b5   :  { %v764_v54 = vld [vmem:[#allocation3] sm:$0xf]  ;;  %v2248_v56 = vld [vmem:[#allocation5 + $0xc] sm:$0xf] }
 0x7b6   :  { %1691 = vmatmul.mubr.msk.f32.vlgmr.msra.gmra.mxu1 %vm205_vm2, %v764_v54  ;;  %v1548_v58 = vcombine.low %v2246_v55, %v2248_v56  ;;  %v1384_v34 = vrot.slane %v2248_v56, %v2251_v57 }
 0x7b7   :  { %1089 = vmatpush1.msra.mxu1 %v1922_v1  ;;  %1136 = vmatprep.mubr.f32.mxu1 %v1871_v3 }
 0x7b8   :  { %1090 = vmatprep.subr.mxu1 %v1927_v2  ;;  %v2263_v36 = vrot.slane %v1548_v58, %v2251_v57 }
 0x7b9   :  { %1091 = vmatpush1.msra.mxu1 %v1939_v4 }
 0x7ba   :  { %1092 = vmatprep.subr.mxu1 %v1948_v6  ;;  %v1563_v29 = vcombine.low %v2260_v59, %v2263_v36 }
 0x7bb   :  { %1093 = vmatpush1.msra.mxu1 %v1960_v9 }
 0x7bc   :  { %1094 = vmatprep.subr.mxu1 %v1969_v11 }
 0x7bd   :  { %1095 = vmatpush1.msra.mxu1 %v1981_v14 }
 0x7be   :  { %1096 = vmatprep.subr.mxu1 %v1990_v16 }
 0x7bf   :  { %1097 = vmatpush1.msra.mxu1 %v1999_v18 }
 0x7c0   :  { %1098 = vmatprep.subr.mxu1 %v2008_v20 }
 0x7c1   :  { %1099 = vmatpush1.msra.mxu1 %v2014_v22 }
 0x7c2   :  { %1100 = vmatprep.subr.mxu1 %v2021_v23 }
 0x7c3   :  { %1101 = vmatpush1.msra.mxu1 %v2027_v24 }
 0x7c4   :  { %1102 = vmatprep.subr.mxu1 %v2034_v25 }
 0x7c5   :  { %1103 = vmatpush1.msra.mxu1 %v2041_v26 }
 0x818   :  { %v883_v23 = vpop.permute.xlu0 %882 }
 0x876   :  { %v850_v1 = vpop.f32.mrf.mxu1 }
 0x878   :  { %v852_v2 = vpop.f32.mrf.mxu1 }
 0x879   :  { %v857_v4 = vcombine.low %v850_v1, %v852_v2  ;;  %v1368_v1 = vrot.slane %v2240_v28, %v2251_v57  ;;  %v1376_v2 = vrot.slane %v2246_v55, %v2251_v57 }
 0x87b   :  { %v859_v6 = vadd.f32 %v857_v4, %v164_v41 }
 0x87d   :  { %v1692_v9 = vmul.f32 -1.442695, %v859_v6  ;;  %870 = vrot.lane.b32.xlu0 %v859_v6, %s1872_s23  ;;  %v867_v11 = vrot.slane %v859_v6, 4  ;;  %v1360_v6 = vrot.slane %v2242_v53, %v2251_v57  ;;  %v166_v53 = vcombine.low %v2165_v43, %v2168_v45  ;;  %v1425_v43 = vld [vmem:[%s2462_s4 + $0x38] sm:$0xff] }
 0x87e   :  { %v1433_v45 = vld [vmem:[%s2463_s5 + $0x38] sm:$0xff] }
 0x87f   :  { %1823 = vpow2.f32 %v1692_v9  ;;  %v1704_v9 = vcombine.high %v1376_v2, %v1384_v34  ;;  %1732 = vmatprep.subr.mxu1 %v1433_v45 }
 0x880   :  { %1825 = vtanh.f32 %v867_v11  ;;  %v1703_v11 = vcombine.high %v1360_v6, %v1368_v1 }
 0x881   :  { %v1449_v56 = vrot.slane %v1704_v9, %v2251_v57 }
 0x88c   :  { %v1824_v14 = vpop.eup %1823 }
 0x88d   :  { %v863_v16 = vadd.f32 1.0, %v1824_v14  ;;  %v1826_v18 = vpop.eup %1825  ;;  %v1442_v14 = vrot.slane %v1703_v11, %v2251_v57 }
 0x88f   :  { %1827 = vrcp.f32 %v863_v16 }
 0x89c   :  { %v1828_v20 = vpop.eup %1827 }
 0x89d   :  { %v886_v22 = vmul.f32 %v1828_v20, %v1826_v18  ;;  %v885_v24 = vmul.f32 %v1828_v20, %v883_v23  ;;  %v1450_v18 = vcombine.low %v1442_v14, %v1449_v56 }
 0x89f   :  { %888 = vrot.lane.b32.xlu1 %v886_v22, %s1872_s23 }
 0x8ef   :  { %v871_v38 = vpop.permute.xlu0 %870 }
 0x8f0   :  { %v872_v39 = vrot.slane %v871_v38, 4 }
 0x8f2   :  { %v1693_v60 = vmul.f32 -1.442695, %v872_v39 }
 0x911   :  { %v889_v25 = vpop.permute.xlu1 %888 }
 0x912   :  { %v891_v26 = vadd.f32 %v889_v25, %v885_v24 }
 0x914   :  { %1829 = vtanh.f32 %v891_v26  ;;  %899 = vrot.lane.b32.xlu0 %v891_v26, %s1872_s23 }
 0x915   :  { %1831 = vpow2.f32 %v1693_v60  ;;  %v1212_v60 = vld [vmem:[%s2458_s2 + $0x78] sm:$0xff] }
 0x916   :  { %1232 = vmatprep.subr.mxu0 %v1212_v60  ;;  %v1426_v60 = vld [vmem:[%s2463_s5] sm:$0xff] }
 0x921   :  { %v1830_v41 = vpop.eup %1829 }
 0x922   :  { %894 = vrot.lane.b32.xlu1 %v1830_v41, %s1872_s23  ;;  %v1832_v61 = vpop.eup %1831 }
 0x923   :  { %v877_v62 = vadd.f32 1.0, %v1832_v61 }
 0x925   :  { %1833 = vrcp.f32 %v877_v62  ;;  %v1211_v62 = vld [vmem:[%s2458_s2 + $0x70] sm:$0xff] }
 0x932   :  { %v1834_v7 = vpop.eup %1833 }
 0x986   :  { %v900_v63 = vpop.permute.xlu0 %899 }
 0x987   :  { %902 = vst.msk [vmem:[#allocation4] sm:$0xf] %vm184_vm0, %v900_v63  ;;  %v1210_v63 = vld [vmem:[%s2458_s2 + $0x68] sm:$0xff] }
 0x98e   :  { %v1024_v5 = vld [vmem:[#allocation4] sm:$0xf] }
 0x98f   :  { %1026 = vrot.lane.b32.xlu1 %v1024_v5, %s1872_s23  ;;  %v1209_v5 = vld [vmem:[%s2458_s2 + $0x60] sm:$0xff] }
 0x994   :  { %v895_v8 = vpop.permute.xlu1 %894 }
 0x995   :  { %v897_v10 = vmul.f32 %v1834_v7, %v895_v8  ;;  %v1208_v8 = vld [vmem:[%s2458_s2 + $0x58] sm:$0xff] }
 0x997   :  { %903 = vst.msk [vmem:[#allocation3] sm:$0xf] %vm184_vm0, %v897_v10  ;;  %905 = vst.msk [vmem:[#allocation5 + $0x10] sm:$0xf] %vm184_vm0, %v897_v10 }
 0x99e   :  { %v908_v12 = vld [vmem:[#allocation3] sm:$0xf] }
 0x99f   :  { %1694 = vmatmul.mubr.msk.f32.vlgmr.msra.gmra.mxu0 %vm205_vm2, %v908_v12  ;;  %v1207_v12 = vld [vmem:[%s2458_s2 + $0x50] sm:$0xff] }
 0x9a0   :  { %1280 = vmatprep.mubr.f32.mxu0 %v1871_v3  ;;  %1233 = vmatpush1.msra.mxu0 %v1211_v62 }
 0x9a1   :  { %1234 = vmatprep.subr.mxu0 %v1210_v63 }
 0x9a2   :  { %1235 = vmatpush1.msra.mxu0 %v1209_v5 }
 0x9a3   :  { %1236 = vmatprep.subr.mxu0 %v1208_v8 }
 0x9a4   :  { %1237 = vmatpush1.msra.mxu0 %v1207_v12 }
 0xa01   :  { %v1027_v3 = vpop.permute.xlu1 %1026 }
 0xa5f   :  { %v994_v13 = vpop.f32.mrf.mxu0 }
 0xa61   :  { %v996_v15 = vpop.f32.mrf.mxu0 }
 0xa62   :  { %v1001_v17 = vcombine.low %v994_v13, %v996_v15  ;;  %v1206_v15 = vld [vmem:[%s2458_s2 + $0x48] sm:$0xff] }
 0xa63   :  { %1238 = vmatprep.subr.mxu0 %v1206_v15 }
 0xa64   :  { %v1003_v21 = vadd.f32 %v1001_v17, %v165_v42  ;;  %v1205_v17 = vld [vmem:[%s2458_s2 + $0x40] sm:$0xff] }
 0xa65   :  { %1239 = vmatpush1.msra.mxu0 %v1205_v17  ;;  %v1342_v17 = vld [vmem:[#allocation5 + $0x10] sm:$0xf] }
 0xa66   :  { %v1695_v31 = vmul.f32 -1.442695, %v1003_v21  ;;  %1014 = vrot.lane.b32.xlu1 %v1003_v21, %s1872_s23  ;;  %v1011_v19 = vrot.slane %v1003_v21, 4  ;;  %v1204_v21 = vld [vmem:[%s2458_s2 + $0x38] sm:$0xff] }
 0xa67   :  { %1240 = vmatprep.subr.mxu0 %v1204_v21 }
 0xa68   :  { %1835 = vpow2.f32 %v1695_v31  ;;  %v1203_v31 = vld [vmem:[%s2458_s2 + $0x30] sm:$0xff] }
 0xa69   :  { %1837 = vtanh.f32 %v1011_v19  ;;  %v1202_v19 = vld [vmem:[%s2458_s2 + $0x28] sm:$0xff]  ;;  %1241 = vmatpush1.msra.mxu0 %v1203_v31 }
 0xa6a   :  { %1242 = vmatprep.subr.mxu0 %v1202_v19 }
 0xa75   :  { %v1836_v27 = vpop.eup %1835 }
 0xa76   :  { %v1007_v30 = vadd.f32 1.0, %v1836_v27  ;;  %v1838_v35 = vpop.eup %1837  ;;  %v1201_v27 = vld [vmem:[%s2458_s2 + $0x20] sm:$0xff] }
 0xa77   :  { %1243 = vmatpush1.msra.mxu0 %v1201_v27  ;;  %v1392_v27 = vrot.slane %v1342_v17, %v2251_v57 }
 0xa78   :  { %1839 = vrcp.f32 %v1007_v30  ;;  %v1200_v30 = vld [vmem:[%s2458_s2 + $0x18] sm:$0xff] }
 0xa79   :  { %1244 = vmatprep.subr.mxu0 %v1200_v30 }
 0xa85   :  { %v1840_v40 = vpop.eup %1839 }
 0xa86   :  { %v1030_v44 = vmul.f32 %v1840_v40, %v1838_v35  ;;  %v1029_v47 = vmul.f32 %v1840_v40, %v1027_v3  ;;  %v1199_v35 = vld [vmem:[%s2458_s2 + $0x10] sm:$0xff]  ;;  %v1198_v40 = vld [vmem:[%s2458_s2 + $0x8] sm:$0xff] }
 0xa87   :  { %1245 = vmatpush1.msra.mxu0 %v1199_v35 }
 0xa88   :  { %1032 = vrot.lane.b32.xlu0 %v1030_v44, %s1872_s23  ;;  %v1197_v44 = vld [vmem:[%s2458_s2] sm:$0xff]  ;;  %1246 = vmatprep.subr.mxu0 %v1198_v40 }
 0xa89   :  { %1247 = vmatpush1.msra.mxu0 %v1197_v44 }
 0xa8a   :  { %1751 = vmatprep.subr.mxu0 %v1425_v43 }
 0xad8   :  { %v1015_v37 = vpop.permute.xlu1 %1014 }
 0xad9   :  { %v1016_v42 = vrot.slane %v1015_v37, 4 }
 0xadb   :  { %v1696_v0 = vmul.f32 -1.442695, %v1016_v42 }
 0xafa   :  { %v1033_v48 = vpop.permute.xlu0 %1032 }
 0xafb   :  { %v1035_v49 = vadd.f32 %v1033_v48, %v1029_v47 }
 0xafd   :  { %1841 = vtanh.f32 %v1035_v49  ;;  %1043 = vrot.lane.b32.xlu1 %v1035_v49, %s1872_s23 }
 0xafe   :  { %1843 = vpow2.f32 %v1696_v0 }
 0xb0a   :  { %v1842_v32 = vpop.eup %1841 }
 0xb0b   :  { %1038 = vrot.lane.b32.xlu0 %v1842_v32, %s1872_s23  ;;  %v1844_v50 = vpop.eup %1843 }
 0xb0c   :  { %v1021_v51 = vadd.f32 1.0, %v1844_v50 }
 0xb0e   :  { %1845 = vrcp.f32 %v1021_v51 }
 0xb1b   :  { %v1846_v54 = vpop.eup %1845 }
 0xb6f   :  { %v1044_v33 = vpop.permute.xlu1 %1043 }
 0xb70   :  { %1046 = vst.msk [vmem:[#allocation4] sm:$0xf] %vm184_vm0, %v1044_v33 }
 0xb77   :  { %v1168_v52 = vld [vmem:[#allocation4] sm:$0xf] }
 0xb78   :  { %1170 = vrot.lane.b32.xlu0 %v1168_v52, %s1872_s23 }
 0xb7d   :  { %v1039_v58 = vpop.permute.xlu0 %1038 }
 0xb7e   :  { %v1041_v4 = vmul.f32 %v1846_v54, %v1039_v58 }
 0xb80   :  { %1049 = vst.msk [vmem:[#allocation5 + $0x14] sm:$0xf] %vm184_vm0, %v1041_v4  ;;  %1047 = vst.msk [vmem:[#allocation3] sm:$0xf] %vm184_vm0, %v1041_v4 }
 0xb87   :  { %v1052_v16 = vld [vmem:[#allocation3] sm:$0xf]  ;;  %v1343_v15 = vld [vmem:[#allocation5 + $0x14] sm:$0xf] }
 0xb88   :  { %1697 = vmatmul.mubr.msk.f32.vlgmr.msra.gmra.mxu1 %vm205_vm2, %v1052_v16  ;;  %v1400_v21 = vrot.slane %v1343_v15, %v2251_v57  ;;  %v1564_v19 = vcombine.low %v1342_v17, %v1343_v15 }
 0xb89   :  { %1748 = vmatprep.mubr.msk.f32.mxu1 %vm205_vm2, %v1450_v18  ;;  %v1432_v18 = vld [vmem:[%s2463_s5 + $0x30] sm:$0xff]  ;;  %1733 = vmatpush3.msra.mxu1 %v1433_v45 }
 0xb8a   :  { %1734 = vmatprep.subr.mxu1 %v1432_v18 }
 0xb8b   :  { %1735 = vmatpush3.msra.mxu1 %v1432_v18 }
 0xbea   :  { %v1171_v61 = vpop.permute.xlu0 %1170 }
 0xc48   :  { %v1138_v28 = vpop.f32.mrf.mxu1 }
 0xc4a   :  { %v1140_v55 = vpop.f32.mrf.mxu1 }
 0xc4b   :  { %v1145_v20 = vcombine.low %v1138_v28, %v1140_v55  ;;  %v1423_v28 = vld [vmem:[%s2462_s4 + $0x28] sm:$0xff] }
 0xc4c   :  { %v1431_v55 = vld [vmem:[%s2463_s5 + $0x28] sm:$0xff] }
 0xc4d   :  { %v1147_v22 = vadd.f32 %v1145_v20, %v166_v53  ;;  %v1422_v53 = vld [vmem:[%s2462_s4 + $0x20] sm:$0xff]  ;;  %1736 = vmatprep.subr.mxu1 %v1431_v55 }
 0xc4e   :  { %v1430_v20 = vld [vmem:[%s2463_s5 + $0x20] sm:$0xff]  ;;  %1737 = vmatpush3.msra.mxu1 %v1431_v55 }
 0xc4f   :  { %v1698_v23 = vmul.f32 -1.442695, %v1147_v22  ;;  %1158 = vrot.lane.b32.xlu0 %v1147_v22, %s1872_s23  ;;  %v1155_v24 = vrot.slane %v1147_v22, 4  ;;  %v1421_v22 = vld [vmem:[%s2462_s4 + $0x18] sm:$0xff]  ;;  %1738 = vmatprep.subr.mxu1 %v1430_v20 }
 0xc50   :  { %1739 = vmatpush3.msra.mxu1 %v1430_v20 }
 0xc51   :  { %1847 = vpow2.f32 %v1698_v23  ;;  %v1429_v23 = vld [vmem:[%s2463_s5 + $0x18] sm:$0xff] }
 0xc52   :  { %1849 = vtanh.f32 %v1155_v24  ;;  %v1420_v24 = vld [vmem:[%s2462_s4 + $0x10] sm:$0xff]  ;;  %1740 = vmatprep.subr.mxu1 %v1429_v23 }
 0xc53   :  { %1741 = vmatpush3.msra.mxu1 %v1429_v23 }
 0xc5e   :  { %v1848_v25 = vpop.eup %1847 }
 0xc5f   :  { %v1151_v26 = vadd.f32 1.0, %v1848_v25  ;;  %v1850_v41 = vpop.eup %1849  ;;  %v1428_v25 = vld [vmem:[%s2463_s5 + $0x10] sm:$0xff] }
 0xc60   :  { %1742 = vmatprep.subr.mxu1 %v1428_v25 }
 0xc61   :  { %1851 = vrcp.f32 %v1151_v26  ;;  %v1419_v26 = vld [vmem:[%s2462_s4 + $0x8] sm:$0xff]  ;;  %1743 = vmatpush3.msra.mxu1 %v1428_v25 }
 0xc6e   :  { %v1852_v38 = vpop.eup %1851 }
 0xc6f   :  { %v1174_v39 = vmul.f32 %v1852_v38, %v1850_v41  ;;  %v1173_v7 = vmul.f32 %v1852_v38, %v1171_v61  ;;  %v1427_v38 = vld [vmem:[%s2463_s5 + $0x8] sm:$0xff] }
 0xc70   :  { %1744 = vmatprep.subr.mxu1 %v1427_v38 }
 0xc71   :  { %1176 = vrot.lane.b32.xlu1 %v1174_v39, %s1872_s23  ;;  %v1418_v39 = vld [vmem:[%s2462_s4] sm:$0xff]  ;;  %1745 = vmatpush3.msra.mxu1 %v1427_v38 }
 0xc72   :  { %1746 = vmatprep.subr.mxu1 %v1426_v60 }
 0xc73   :  { %1747 = vmatpush3.msra.mxu1 %v1426_v60 }
 0xcc1   :  { %v1159_v47 = vpop.permute.xlu0 %1158 }
 0xcc2   :  { %v1160_v48 = vrot.slane %v1159_v47, 4  ;;  %v1572_v47 = vrot.slane %v1564_v19, %v2251_v57 }
 0xcc4   :  { %v1699_v49 = vmul.f32 -1.442695, %v1160_v48 }
 0xce3   :  { %v1177_v10 = vpop.permute.xlu1 %1176 }
 0xce4   :  { %v1179_v13 = vadd.f32 %v1177_v10, %v1173_v7 }
 0xce6   :  { %1853 = vtanh.f32 %v1179_v13  ;;  %1187 = vrot.lane.b32.xlu0 %v1179_v13, %s1872_s23 }
 0xce7   :  { %1855 = vpow2.f32 %v1699_v49 }
 0xcf3   :  { %v1854_v3 = vpop.eup %1853 }
 0xcf4   :  { %1182 = vrot.lane.b32.xlu1 %v1854_v3, %s1872_s23  ;;  %v1856_v32 = vpop.eup %1855  ;;  %v1705_v3 = vcombine.high %v1392_v27, %v1400_v21 }
 0xcf5   :  { %v1165_v37 = vadd.f32 1.0, %v1856_v32 }
 0xcf7   :  { %1857 = vrcp.f32 %v1165_v37  ;;  %v1459_v37 = vrot.slane %v1705_v3, %v2251_v57 }
 0xd04   :  { %v1858_v50 = vpop.eup %1857 }
 0xd58   :  { %v1188_v42 = vpop.permute.xlu0 %1187 }
 0xd59   :  { %1190 = vst.msk [vmem:[#allocation4] sm:$0xf] %vm184_vm0, %v1188_v42 }
 0xd60   :  { %v1312_v0 = vld [vmem:[#allocation4] sm:$0xf] }
 0xd61   :  { %1314 = vrot.lane.b32.xlu1 %v1312_v0, %s1872_s23 }
 0xd66   :  { %v1183_v51 = vpop.permute.xlu1 %1182 }
 0xd67   :  { %v1185_v33 = vmul.f32 %v1858_v50, %v1183_v51 }
 0xd69   :  { %1193 = vst.msk [vmem:[#allocation5 + $0x18] sm:$0xf] %vm184_vm0, %v1185_v33  ;;  %1191 = vst.msk [vmem:[#allocation3] sm:$0xf] %vm184_vm0, %v1185_v33  ;;  %v1711_v33 = vld [vmem:[%s2464_s6] ss:$0 sm:$0xff] }
 0xd70   :  { %v1196_v52 = vld [vmem:[#allocation3] sm:$0xf] }
 0xd71   :  { %1700 = vmatmul.mubr.msk.f32.vlgmr.msra.gmra.mxu0 %vm205_vm2, %v1196_v52  ;;  %v1344_v31 = vld [vmem:[#allocation5 + $0x18] sm:$0xf] }
 0xd72   :  { %1767 = vmatprep.mubr.msk.f32.mxu0 %vm205_vm2, %v1563_v29  ;;  %1752 = vmatpush3.msra.mxu0 %v1425_v43  ;;  %v1408_v40 = vrot.slane %v1344_v31, %v2251_v57 }
 0xdd3   :  { %v1315_v29 = vpop.permute.xlu1 %1314 }
 0xe31   :  { %v1282_v34 = vpop.f32.mrf.mxu0 }
 0xe33   :  { %v1284_v54 = vpop.f32.mrf.mxu0 }
 0xe34   :  { %v1289_v58 = vcombine.low %v1282_v34, %v1284_v54 }
 0xe36   :  { %v1291_v1 = vadd.f32 %v1289_v58, %v167_v46  ;;  %v1424_v46 = vld [vmem:[%s2462_s4 + $0x30] sm:$0xff] }
 0xe37   :  { %1753 = vmatprep.subr.mxu0 %v1424_v46 }
 0xe38   :  { %v1701_v2 = vmul.f32 -1.442695, %v1291_v1  ;;  %1302 = vrot.lane.b32.xlu1 %v1291_v1, %s1872_s23  ;;  %v1299_v4 = vrot.slane %v1291_v1, 4  ;;  %1754 = vmatpush3.msra.mxu0 %v1424_v46 }
 0xe39   :  { %1755 = vmatprep.subr.mxu0 %v1423_v28 }
 0xe3a   :  { %1859 = vpow2.f32 %v1701_v2  ;;  %1756 = vmatpush3.msra.mxu0 %v1423_v28 }
 0xe3b   :  { %1861 = vtanh.f32 %v1299_v4  ;;  %1757 = vmatprep.subr.mxu0 %v1422_v53 }
 0xe3c   :  { %1758 = vmatpush3.msra.mxu0 %v1422_v53 }
 0xe3d   :  { %1759 = vmatprep.subr.mxu0 %v1421_v22 }
 0xe3e   :  { %1760 = vmatpush3.msra.mxu0 %v1421_v22 }
 0xe3f   :  { %1761 = vmatprep.subr.mxu0 %v1420_v24 }
 0xe40   :  { %1762 = vmatpush3.msra.mxu0 %v1420_v24 }
 0xe41   :  { %1763 = vmatprep.subr.mxu0 %v1419_v26 }
 0xe42   :  { %1764 = vmatpush3.msra.mxu0 %v1419_v26 }
 0xe43   :  { %1765 = vmatprep.subr.mxu0 %v1418_v39 }
 0xe44   :  { %1766 = vmatpush3.msra.mxu0 %v1418_v39 }
 0xe47   :  { %v1860_v6 = vpop.eup %1859 }
 0xe48   :  { %v1295_v9 = vadd.f32 1.0, %v1860_v6  ;;  %v1862_v11 = vpop.eup %1861 }
 0xe4a   :  { %1863 = vrcp.f32 %v1295_v9 }
 0xe57   :  { %v1864_v59 = vpop.eup %1863 }
 0xe58   :  { %v1318_v36 = vmul.f32 %v1864_v59, %v1862_v11  ;;  %v1317_v56 = vmul.f32 %v1864_v59, %v1315_v29 }
 0xe5a   :  { %1320 = vrot.lane.b32.xlu0 %v1318_v36, %s1872_s23 }
 0xeaa   :  { %v1303_v61 = vpop.permute.xlu1 %1302 }
 0xeab   :  { %v1304_v62 = vrot.slane %v1303_v61, 4 }
 0xead   :  { %v1702_v63 = vmul.f32 -1.442695, %v1304_v62 }
 0xecc   :  { %v1321_v14 = vpop.permute.xlu0 %1320 }
 0xecd   :  { %v1323_v16 = vadd.f32 %v1321_v14, %v1317_v56 }
 0xecf   :  { %1865 = vtanh.f32 %v1323_v16  ;;  %1331 = vrot.lane.b32.xlu1 %v1323_v16, %s1872_s23 }
 0xed0   :  { %1867 = vpow2.f32 %v1702_v63 }
 0xedc   :  { %v1866_v41 = vpop.eup %1865 }
 0xedd   :  { %1326 = vrot.lane.b32.xlu0 %v1866_v41, %s1872_s23  ;;  %v1868_v5 = vpop.eup %1867 }
 0xede   :  { %v1309_v7 = vadd.f32 1.0, %v1868_v5 }
 0xee0   :  { %1869 = vrcp.f32 %v1309_v7 }
 0xeed   :  { %v1870_v10 = vpop.eup %1869 }
 0xf41   :  { %v1332_v8 = vpop.permute.xlu1 %1331 }
 0xf42   :  { %1334 = vst.msk [vmem:[#allocation4] sm:$0xf] %vm184_vm0, %v1332_v8 }
 0xf4f   :  { %v1327_v12 = vpop.permute.xlu0 %1326 }
 0xf50   :  { %v1329_v13 = vmul.f32 %v1870_v10, %v1327_v12 }
 0xf52   :  { %1335 = vst.msk [vmem:[#allocation3] sm:$0xf] %vm184_vm0, %v1329_v13  ;;  %1337 = vst.msk [vmem:[#allocation5 + $0x1c] sm:$0xf] %vm184_vm0, %v1329_v13 }
 0xf59   :  { %v1345_v30 = vld [vmem:[#allocation5 + $0x1c] sm:$0xf] }
 0xf5a   :  { %v1565_v35 = vcombine.low %v1344_v31, %v1345_v30  ;;  %v1416_v44 = vrot.slane %v1345_v30, %v2251_v57 }
 0xf5c   :  { %v1579_v48 = vrot.slane %v1565_v35, %v2251_v57  ;;  %v1706_v49 = vcombine.high %v1408_v40, %v1416_v44 }
 0xf5e   :  { %v1580_v32 = vcombine.low %v1572_v47, %v1579_v48  ;;  %v1466_v42 = vrot.slane %v1706_v49, %v2251_v57 }
 0xf60   :  { %1768 = vmatmul.mubr.msk.f32.vlgmr.msra.gmra.mxu0 %vm205_vm2, %v1580_v32  ;;  %v1467_v0 = vcombine.low %v1459_v37, %v1466_v42 }
 0xf62   :  { %1749 = vmatmul.mubr.msk.f32.vlgmr.msra.gmra.mxu1 %vm205_vm2, %v1467_v0 }
0x1020   :  { %v1769_v50 = vpop.f32.mrf.mxu0 }
0x1022   :  { %v1750_v51 = vpop.f32.mrf.mxu1  ;;  %v1651_v34 = vpop.f32.mrf.mxu0 }
0x1023   :  { %v1657_v52 = vadd.f32 %v1769_v50, %v1750_v51 }
0x1024   :  { %v1538_v54 = vpop.f32.mrf.mxu1 }
0x1025   :  { %v1668_v58 = vadd.f32 %v1711_v33, %v1657_v52  ;;  %v1652_v1 = vadd.f32 %v1651_v34, %v1538_v54 }
0x1027   :  { %1670 = vst.msk [vmem:[%s2465_s7 + $0x8] sm:$0xff] %vm50_vm1, %v1668_v58  ;;  %v1667_v57 = vadd.f32 %v1711_v33, %v1652_v1 }
0x1029   :  { %1669 = vst.msk [vmem:[%s2465_s7] sm:$0xff] %vm50_vm1, %v1667_v57 }

</bundles_post_ra>
